<compile_context>
chip_gen: v7x
topology: tpu7x:2x2x1
jax: 0.10.0
libtpu: 0.0.40
codegen_flags: <defaults>
</compile_context>

<pallas_src>
import functools
import math

import jax
import jax.numpy as jnp
from jax.experimental import pallas as pl
from jax.experimental.pallas import tpu as pltpu


def _round_up(x, m):
    return ((x + m - 1) // m) * m


def _num_tensorcores():
    """2 on v7x-class chips (megacore), else 1. Only steers heuristics."""
    try:
        kind = jax.devices()[0].device_kind.lower()
    except Exception:
        return 1
    return 2 if ("v7" in kind or "7x" in kind) else 1


# ----------------------------------------------------------------------------
# Pallas kernel: full self-attention layer for a (Bt, Qp, Cp) tile.
# ----------------------------------------------------------------------------
def _self_attn_layer_kernel(
    x_ref,       # (Bt, Qp, Cp) f32   queries, zero padded
    pos_ref,     # (Bt, Qp, Cp) f32   positional embedding, zero padded
    wqk_ref,     # (Cp, 2*Cp)   mdt   [wq*scale | wk], pre-transposed
    wv_ref,      # (Cp, Cp)     mdt
    wo_ref,      # (Cp, Cp)     mdt
    vec_ref,     # (8, Cp)      f32   rows: bq*scale, bk, bv, bo, gamma, beta, 0, 0
    out_ref,     # (Bt, Qp, Cp)
    o_scr,       # (Bt, Qp, Cp) mdt   scratch for the assembled attention output
    *,
    num_heads_padded: int,
    head_dim: int,
    q_valid: int,
    c_valid: int,
):
    Bt, Qp, Cp = x_ref.shape
    M = Bt * Qp
    Hh, D = num_heads_padded, head_dim
    # Every scratch column [h*D:(h+1)*D) for h in range(Hh) is rewritten each
    # grid step; this is what makes skipping a zero-init of o_scr correct.
    assert Hh * D == Cp
    f32 = jnp.float32
    mdt = wqk_ref.dtype                       # matmul operand dtype (bf16 or f32)
    approx = bool(mdt == jnp.bfloat16)        # EUP approx recip only on bf16 path

    x = x_ref[...]                            # (Bt, Qp, Cp) f32
    qk_in = x + pos_ref[...]                  # q = k = tgt + query_pos
    xm = x.reshape(M, Cp)                     # leading-dim merge (cheap)
    qkm = qk_in.reshape(M, Cp)

    vecs = vec_ref[...]                       # (8, Cp) packed parameter vectors
    bq, bk, bv = vecs[0:1], vecs[1:2], vecs[2:3]
    bo, gamma, beta = vecs[3:4], vecs[4:5], vecs[5:6]

    # Fused Q/K projection (one wide matmul) + V projection; f32 accumulation.
    qk = jnp.dot(qkm.astype(mdt), wqk_ref[...], preferred_element_type=f32)
    v = jnp.dot(xm.astype(mdt), wv_ref[...], preferred_element_type=f32) + bv
    q = qk[:, :Cp] + bq                       # 1/sqrt(D) already folded in
    k = qk[:, Cp:] + bk

    # Head split, hoisted out of any per-batch loop: Hh lane slices per tensor
    # (not Hh*Bt) + one leading-axis stack, then leading-dim merges only.
    def to_heads(t):                          # (M, Cp) -> (Bt*Hh, Qp, D)
        parts = [t[:, h * D:(h + 1) * D].reshape(Bt, Qp, D).astype(mdt)
                 for h in range(Hh)]
        return jnp.stack(parts, axis=1).reshape(Bt * Hh, Qp, D)

    q3, k3, v3 = to_heads(q), to_heads(k), to_heads(v)

    # One batched score matmul over the merged (batch, head) group dim.
    s = jnp.einsum("gqd,gkd->gqk", q3, k3,
                   preferred_element_type=f32)            # (Bt*Hh, Qp, Qp) f32
    if q_valid < Qp:                                      # mask zero-padded keys
        # -1e30 is safe only because scores stay f32 end-to-end.
        key_ids = jax.lax.broadcasted_iota(jnp.int32, (1, 1, Qp), 2)
        s = jnp.where(key_ids < q_valid, s, -1e30)

    # Divide-free softmax: normalize the (G, Qp, D) output, not (G, Qp, Qp).
    s = s - jnp.max(s, axis=-1, keepdims=True)
    p = jnp.exp(s)
    l = jnp.sum(p, axis=-1, keepdims=True)                # (Bt*Hh, Qp, 1)
    o3 = jnp.einsum("gqk,gkd->gqd", p.astype(mdt), v3,
                    preferred_element_type=f32)           # (Bt*Hh, Qp, D)
    o3 = o3 * pl.reciprocal(l, approx=approx)             # intentional approx
    o4 = o3.reshape(Bt, Hh, Qp, D)                        # leading-dim split

    # One store per head (covering all stacked batches) into the mdt scratch.
    for h in range(Hh):
        o_scr[:, :, h * D:(h + 1) * D] = o4[:, h].astype(mdt)

    # Output projection over the whole lane-dense slab (wide M, wide N, K=Cp).
    attn = o_scr[...].reshape(M, Cp)                      # already mdt
    o = jnp.dot(attn, wo_ref[...], preferred_element_type=f32) + bo

    # Residual + LayerNorm over the real c_valid channels (eps=1e-5, biased var).
    # Padded lanes of t are exactly zero by construction.
    t = xm + o
    mean = jnp.sum(t, axis=-1, keepdims=True) * (1.0 / c_valid)
    cen = t - mean
    if c_valid < Cp:
        lane_ids = jax.lax.broadcasted_iota(jnp.int32, (1, Cp), 1)
        cen = jnp.where(lane_ids < c_valid, cen, 0.0)
    var = jnp.sum(cen * cen, axis=-1, keepdims=True) * (1.0 / c_valid)
    y = cen * jax.lax.rsqrt(var + 1e-5) * gamma + beta    # padded lanes -> 0

    out_ref[...] = y.reshape(Bt, Qp, Cp).astype(out_ref.dtype)


# ----------------------------------------------------------------------------
# One-time parameter preprocessing (hoisted out of the per-call wrapper).
# ----------------------------------------------------------------------------
def prepare_params(params, d_model, num_heads, *, matmul_dtype=jnp.bfloat16):
    C, H = d_model, num_heads
    assert C % H == 0
    D = C // H
    # Lane-dense channels that also tile evenly into heads (asserted, no silent
    # fallback to a non-128-multiple Cp).
    Cp = _round_up(C, 128)
    while Cp % D:
        Cp += 128
    assert Cp % 128 == 0 and Cp % D == 0
    scale = 1.0 / math.sqrt(D)

    in_w = jnp.asarray(params["in_proj_weight"], jnp.float32)      # (3C, C)
    in_b = jnp.asarray(params["in_proj_bias"], jnp.float32)        # (3C,)
    wq = in_w[:C].T * scale            # fold 1/sqrt(D) into the q projection
    wk = in_w[C:2 * C].T
    wv = in_w[2 * C:].T
    wo = jnp.asarray(params["out_proj_weight"], jnp.float32).T

    def pad_mat(w):
        return jnp.zeros((Cp, Cp), jnp.float32).at[:C, :C].set(w)

    wqk = jnp.concatenate([pad_mat(wq), pad_mat(wk)], axis=1)      # (Cp, 2Cp)

    vecs = jnp.zeros((8, Cp), jnp.float32)
    vecs = vecs.at[0, :C].set(in_b[:C] * scale)                    # bq * scale
    vecs = vecs.at[1, :C].set(in_b[C:2 * C])                       # bk
    vecs = vecs.at[2, :C].set(in_b[2 * C:])                        # bv
    vecs = vecs.at[3, :C].set(jnp.asarray(params["out_proj_bias"], jnp.float32))
    vecs = vecs.at[4, :C].set(jnp.asarray(params["ln_weight"], jnp.float32))
    vecs = vecs.at[5, :C].set(jnp.asarray(params["ln_bias"], jnp.float32))

    return {
        "wqk": wqk.astype(matmul_dtype),
        "wv": pad_mat(wv).astype(matmul_dtype),
        "wo": pad_mat(wo).astype(matmul_dtype),
        "vecs": vecs,
    }


# ----------------------------------------------------------------------------
# Forward wrapper.
# ----------------------------------------------------------------------------
def self_attention_layer(queries, query_embed, prepared, *, num_heads,
                         block_b=None):
    """queries: [B, Q, C], query_embed: [B, Q, C] or None -> [B, Q, C]."""
    B, Q, C = queries.shape
    assert C % num_heads == 0
    D = C // num_heads
    Cp = prepared["wv"].shape[0]
    mdt = prepared["wv"].dtype
    assert Cp % 128 == 0 and Cp % D == 0, "Cp must stay lane-dense and head-tiled"
    Hh = Cp // D
    # bf16 native tiles are (16,128): align Q to 16 rows on the bf16 path.
    q_align = 16 if mdt == jnp.bfloat16 else 8
    Qp = _round_up(Q, q_align)
    n_tc = _num_tensorcores()

    if query_embed is None:
        query_embed = jnp.zeros_like(queries)

    # Lane-dense (Cp multiple of 128) / sublane-aligned tiles, zero padded.
    pad = ((0, 0), (0, Qp - Q), (0, Cp - C))
    x = jnp.pad(queries.astype(jnp.float32), pad)
    pos = jnp.pad(query_embed.astype(jnp.float32), pad)

    if block_b is None:
        # Fold batches into one grid step up to M = Bt*Qp <= 256 (256-wide MXU,
        # amortizes the ~0.35us per-step overhead).  On 2-TC (v7x) chips keep
        # >= 2 "parallel" steps when B allows; on single-TC chips fold it all.
        block_b = 1
        for d in range(1, B + 1):
            if B % d:
                continue
            if d * Qp > 256:
                continue
            if n_tc > 1 and B >= n_tc and B // d < n_tc:
                continue
            block_b = d
    assert B % block_b == 0
    Bt = block_b

    kernel = functools.partial(
        _self_attn_layer_kernel,
        num_heads_padded=Hh, head_dim=D, q_valid=Q, c_valid=C)

    batch_spec = pl.BlockSpec((Bt, Qp, Cp), lambda b: (b, 0, 0))

    # Explicit VMEM budget: double-buffered x/pos/out blocks + weights
    # (conservatively counted double-buffered even though their index maps are
    # constant) + in-kernel intermediates + scratch, with 2x margin, clamped so
    # we never claim all of v7x's 64 MiB per-TC VMEM.
    w_elt = jnp.dtype(mdt).itemsize if hasattr(mdt, "itemsize") else 4
    blk_bytes = Bt * Qp * Cp * 4
    w_bytes = 4 * Cp * Cp * w_elt + 8 * Cp * 4
    interm_bytes = (10 * Bt * Qp * Cp + 3 * Bt * Hh * Qp * Qp) * 4
    est = 3 * 2 * blk_bytes + 2 * w_bytes + interm_bytes + Bt * Qp * Cp * w_elt
    vmem_cap = (48 << 20) if n_tc > 1 else (96 << 20)
    vmem_limit = int(min(vmem_cap, max(32 << 20, 2 * est)))

    out = pl.pallas_call(
        kernel,
        out_shape=jax.ShapeDtypeStruct((B, Qp, Cp), queries.dtype),
        grid_spec=pltpu.PrefetchScalarGridSpec(
            num_scalar_prefetch=0,
            grid=(B // Bt,),
            in_specs=[
                batch_spec,                                       # x
                batch_spec,                                       # pos
                pl.BlockSpec((Cp, 2 * Cp), lambda b: (0, 0)),     # wqk (constant)
                pl.BlockSpec((Cp, Cp), lambda b: (0, 0)),         # wv  (constant)
                pl.BlockSpec((Cp, Cp), lambda b: (0, 0)),         # wo  (constant)
                pl.BlockSpec((8, Cp), lambda b: (0, 0)),          # packed vectors
            ],
            out_specs=batch_spec,
            scratch_shapes=[pltpu.VMEM((Bt, Qp, Cp), mdt)],
        ),
        compiler_params=pltpu.CompilerParams(
            dimension_semantics=("parallel",),
            vmem_limit_bytes=vmem_limit),
    )(x, pos, prepared["wqk"], prepared["wv"], prepared["wo"], prepared["vecs"])

    return out[:, :Q, :C]


# ----------------------------------------------------------------------------
# Deterministic parameter init (xavier_uniform for matrices, zeros/ones else).
# ----------------------------------------------------------------------------
def _xavier_uniform(key, shape, dtype=jnp.float32):
    fan_out, fan_in = shape
    limit = (6.0 / (fan_in + fan_out)) ** 0.5
    return jax.random.uniform(key, shape, dtype, minval=-limit, maxval=limit)


def init_params(key, d_model):
    k1, k2 = jax.random.split(key)
    return {
        "in_proj_weight": _xavier_uniform(k1, (3 * d_model, d_model)),
        "in_proj_bias": jnp.zeros((3 * d_model,), jnp.float32),
        "out_proj_weight": _xavier_uniform(k2, (d_model, d_model)),
        "out_proj_bias": jnp.zeros((d_model,), jnp.float32),
        "ln_weight": jnp.ones((d_model,), jnp.float32),
        "ln_bias": jnp.zeros((d_model,), jnp.float32),
    }


# ----------------------------------------------------------------------------
# Pure-JAX reference (mirrors nn.MultiheadAttention + LayerNorm, forward_post).
# ----------------------------------------------------------------------------
def reference(queries, query_embed, params, *, num_heads):
    B, Q, C = queries.shape
    D = C // num_heads
    x = queries
    pos = query_embed if query_embed is not None else jnp.zeros_like(x)
    qk = x + pos
    in_w, in_b = params["in_proj_weight"], params["in_proj_bias"]
    q = qk @ in_w[:C].T + in_b[:C]
    k = qk @ in_w[C:2 * C].T + in_b[C:2 * C]
    v = x @ in_w[2 * C:].T + in_b[2 * C:]
    q = q.reshape(B, Q, num_heads, D).transpose(0, 2, 1, 3) / (D ** 0.5)
    k = k.reshape(B, Q, num_heads, D).transpose(0, 2, 1, 3)
    v = v.reshape(B, Q, num_heads, D).transpose(0, 2, 1, 3)
    s = jnp.einsum("bhqd,bhkd->bhqk", q, k)
    p = jax.nn.softmax(s, axis=-1)
    o = jnp.einsum("bhqk,bhkd->bhqd", p, v)
    o = o.transpose(0, 2, 1, 3).reshape(B, Q, C)
    o = o @ params["out_proj_weight"].T + params["out_proj_bias"]
    t = x + o
    mean = t.mean(-1, keepdims=True)
    var = ((t - mean) ** 2).mean(-1, keepdims=True)
    return (t - mean) / jnp.sqrt(var + 1e-5) * params["ln_weight"] + params["ln_bias"]


if __name__ == "__main__":
    B, Q, C, H = 2, 8, 32, 4
    key = jax.random.PRNGKey(0)
    kp, kx, ke = jax.random.split(key, 3)
    params = init_params(kp, C)
    queries = jax.random.normal(kx, (B, Q, C), jnp.float32)
    query_embed = jax.random.normal(ke, (B, Q, C), jnp.float32)

    layer = jax.jit(self_attention_layer,
                    static_argnames=("num_heads", "block_b"))
    ref = reference(queries, query_embed, params, num_heads=H)

    # f32 MXU-operand path: tight numerical check against the reference.
    prep_f32 = prepare_params(params, C, H, matmul_dtype=jnp.float32)
    out_f32 = jax.block_until_ready(
        layer(queries, query_embed, prep_f32, num_heads=H))
    assert out_f32.shape == (B, Q, C)
    assert jnp.allclose(out_f32, ref, atol=2e-4, rtol=2e-4), (
        float(jnp.max(jnp.abs(out_f32 - ref))))

    # Default bf16 MXU-operand path (f32 accumulation): looser tolerance for
    # bf16 operand rounding + approx reciprocal.
    prep_bf16 = prepare_params(params, C, H)
    out_bf16 = jax.block_until_ready(
        layer(queries, query_embed, prep_bf16, num_heads=H))
    assert out_bf16.shape == (B, Q, C)
    assert jnp.allclose(out_bf16, ref, atol=1e-1, rtol=1e-1), (
        float(jnp.max(jnp.abs(out_bf16 - ref))))

    print("KERNEL_OK")
</pallas_src>

<mosaic_0001>
module attributes {stable_mosaic.version = 11 : i64} {
  func.func @_self_attn_layer_kernel(%arg0: i32, %arg1: memref<2x8x128xf32, #tpu.memory_space<vmem>>, %arg2: memref<2x8x128xf32, #tpu.memory_space<vmem>>, %arg3: memref<128x256xf32, #tpu.memory_space<vmem>>, %arg4: memref<128x128xf32, #tpu.memory_space<vmem>>, %arg5: memref<128x128xf32, #tpu.memory_space<vmem>>, %arg6: memref<8x128xf32, #tpu.memory_space<vmem>>, %arg7: memref<2x8x128xf32, #tpu.memory_space<vmem>>, %arg8: memref<2x8x128xf32, #tpu.memory_space<vmem>>) attributes {dimension_semantics = [#tpu.dimension_semantics<parallel>], iteration_bounds = array<i64: 1>, scalar_prefetch = 0 : i64, scratch_operands = 1 : i64, tpu.core_type = #tpu.core_type<tc>, window_params = [{transform_indices = @transform_0, window_bounds = array<i64: 2, 8, 128>}, {transform_indices = @transform_1, window_bounds = array<i64: 2, 8, 128>}, {pipeline_mode = #tpu.pipeline_mode<synchronous>, transform_indices = @transform_2, window_bounds = array<i64: 128, 256>}, {pipeline_mode = #tpu.pipeline_mode<synchronous>, transform_indices = @transform_3, window_bounds = array<i64: 128, 128>}, {pipeline_mode = #tpu.pipeline_mode<synchronous>, transform_indices = @transform_4, window_bounds = array<i64: 128, 128>}, {pipeline_mode = #tpu.pipeline_mode<synchronous>, transform_indices = @transform_5, window_bounds = array<i64: 8, 128>}, {transform_indices = @transform_6, window_bounds = array<i64: 2, 8, 128>}]} {
    %c0 = arith.constant 0 : index
    %c0_0 = arith.constant 0 : index
    %c0_1 = arith.constant 0 : index
    %0 = vector.load %arg1[%c0, %c0_0, %c0_1] : memref<2x8x128xf32, #tpu.memory_space<vmem>>, vector<2x8x128xf32>
    %c0_2 = arith.constant 0 : index
    %c0_3 = arith.constant 0 : index
    %c0_4 = arith.constant 0 : index
    %1 = vector.load %arg2[%c0_2, %c0_3, %c0_4] : memref<2x8x128xf32, #tpu.memory_space<vmem>>, vector<2x8x128xf32>
    %2 = arith.addf %0, %1 : vector<2x8x128xf32>
    %3 = vector.shape_cast %0 : vector<2x8x128xf32> to vector<16x128xf32>
    %4 = vector.shape_cast %2 : vector<2x8x128xf32> to vector<16x128xf32>
    %c0_5 = arith.constant 0 : index
    %c0_6 = arith.constant 0 : index
    %5 = vector.load %arg6[%c0_5, %c0_6] : memref<8x128xf32, #tpu.memory_space<vmem>>, vector<8x128xf32>
    %6 = vector.extract_strided_slice %5 {offsets = [0, 0], sizes = [1, 128], strides = [1, 1]} : vector<8x128xf32> to vector<1x128xf32>
    %7 = vector.extract_strided_slice %5 {offsets = [1, 0], sizes = [1, 128], strides = [1, 1]} : vector<8x128xf32> to vector<1x128xf32>
    %8 = vector.extract_strided_slice %5 {offsets = [2, 0], sizes = [1, 128], strides = [1, 1]} : vector<8x128xf32> to vector<1x128xf32>
    %9 = vector.extract_strided_slice %5 {offsets = [3, 0], sizes = [1, 128], strides = [1, 1]} : vector<8x128xf32> to vector<1x128xf32>
    %10 = vector.extract_strided_slice %5 {offsets = [4, 0], sizes = [1, 128], strides = [1, 1]} : vector<8x128xf32> to vector<1x128xf32>
    %11 = vector.extract_strided_slice %5 {offsets = [5, 0], sizes = [1, 128], strides = [1, 1]} : vector<8x128xf32> to vector<1x128xf32>
    %c0_7 = arith.constant 0 : index
    %c0_8 = arith.constant 0 : index
    %12 = vector.load %arg3[%c0_7, %c0_8] : memref<128x256xf32, #tpu.memory_space<vmem>>, vector<128x256xf32>
    %cst = arith.constant dense<0.000000e+00> : vector<16x256xf32>
    %13 = tpu.matmul %4, %12, %cst {dimension_numbers = #tpu.dot_dimension_numbers<[1], [0], [0], [1], [0, 0, 1, 1], [], []>} : vector<16x128xf32>, vector<128x256xf32>, vector<16x256xf32> -> vector<16x256xf32>
    %c0_9 = arith.constant 0 : index
    %c0_10 = arith.constant 0 : index
    %14 = vector.load %arg4[%c0_9, %c0_10] : memref<128x128xf32, #tpu.memory_space<vmem>>, vector<128x128xf32>
    %cst_11 = arith.constant dense<0.000000e+00> : vector<16x128xf32>
    %15 = tpu.matmul %3, %14, %cst_11 {dimension_numbers = #tpu.dot_dimension_numbers<[1], [0], [0], [1], [0, 0, 1, 1], [], []>} : vector<16x128xf32>, vector<128x128xf32>, vector<16x128xf32> -> vector<16x128xf32>
    %16 = vector.broadcast %8 : vector<1x128xf32> to vector<16x128xf32>
    %17 = arith.addf %15, %16 : vector<16x128xf32>
    %18 = vector.extract_strided_slice %13 {offsets = [0, 0], sizes = [16, 128], strides = [1, 1]} : vector<16x256xf32> to vector<16x128xf32>
    %19 = vector.broadcast %6 : vector<1x128xf32> to vector<16x128xf32>
    %20 = arith.addf %18, %19 : vector<16x128xf32>
    %21 = vector.extract_strided_slice %13 {offsets = [0, 128], sizes = [16, 128], strides = [1, 1]} : vector<16x256xf32> to vector<16x128xf32>
    %22 = vector.broadcast %7 : vector<1x128xf32> to vector<16x128xf32>
    %23 = arith.addf %21, %22 : vector<16x128xf32>
    %24 = vector.extract_strided_slice %20 {offsets = [0, 0], sizes = [16, 8], strides = [1, 1]} : vector<16x128xf32> to vector<16x8xf32>
    %25 = vector.shape_cast %24 : vector<16x8xf32> to vector<2x8x8xf32>
    %26 = vector.extract_strided_slice %20 {offsets = [0, 8], sizes = [16, 8], strides = [1, 1]} : vector<16x128xf32> to vector<16x8xf32>
    %27 = vector.shape_cast %26 : vector<16x8xf32> to vector<2x8x8xf32>
    %28 = vector.extract_strided_slice %20 {offsets = [0, 16], sizes = [16, 8], strides = [1, 1]} : vector<16x128xf32> to vector<16x8xf32>
    %29 = vector.shape_cast %28 : vector<16x8xf32> to vector<2x8x8xf32>
    %30 = vector.extract_strided_slice %20 {offsets = [0, 24], sizes = [16, 8], strides = [1, 1]} : vector<16x128xf32> to vector<16x8xf32>
    %31 = vector.shape_cast %30 : vector<16x8xf32> to vector<2x8x8xf32>
    %32 = vector.extract_strided_slice %20 {offsets = [0, 32], sizes = [16, 8], strides = [1, 1]} : vector<16x128xf32> to vector<16x8xf32>
    %33 = vector.shape_cast %32 : vector<16x8xf32> to vector<2x8x8xf32>
    %34 = vector.extract_strided_slice %20 {offsets = [0, 40], sizes = [16, 8], strides = [1, 1]} : vector<16x128xf32> to vector<16x8xf32>
    %35 = vector.shape_cast %34 : vector<16x8xf32> to vector<2x8x8xf32>
    %36 = vector.extract_strided_slice %20 {offsets = [0, 48], sizes = [16, 8], strides = [1, 1]} : vector<16x128xf32> to vector<16x8xf32>
    %37 = vector.shape_cast %36 : vector<16x8xf32> to vector<2x8x8xf32>
    %38 = vector.extract_strided_slice %20 {offsets = [0, 56], sizes = [16, 8], strides = [1, 1]} : vector<16x128xf32> to vector<16x8xf32>
    %39 = vector.shape_cast %38 : vector<16x8xf32> to vector<2x8x8xf32>
    %40 = vector.extract_strided_slice %20 {offsets = [0, 64], sizes = [16, 8], strides = [1, 1]} : vector<16x128xf32> to vector<16x8xf32>
    %41 = vector.shape_cast %40 : vector<16x8xf32> to vector<2x8x8xf32>
    %42 = vector.extract_strided_slice %20 {offsets = [0, 72], sizes = [16, 8], strides = [1, 1]} : vector<16x128xf32> to vector<16x8xf32>
    %43 = vector.shape_cast %42 : vector<16x8xf32> to vector<2x8x8xf32>
    %44 = vector.extract_strided_slice %20 {offsets = [0, 80], sizes = [16, 8], strides = [1, 1]} : vector<16x128xf32> to vector<16x8xf32>
    %45 = vector.shape_cast %44 : vector<16x8xf32> to vector<2x8x8xf32>
    %46 = vector.extract_strided_slice %20 {offsets = [0, 88], sizes = [16, 8], strides = [1, 1]} : vector<16x128xf32> to vector<16x8xf32>
    %47 = vector.shape_cast %46 : vector<16x8xf32> to vector<2x8x8xf32>
    %48 = vector.extract_strided_slice %20 {offsets = [0, 96], sizes = [16, 8], strides = [1, 1]} : vector<16x128xf32> to vector<16x8xf32>
    %49 = vector.shape_cast %48 : vector<16x8xf32> to vector<2x8x8xf32>
    %50 = vector.extract_strided_slice %20 {offsets = [0, 104], sizes = [16, 8], strides = [1, 1]} : vector<16x128xf32> to vector<16x8xf32>
    %51 = vector.shape_cast %50 : vector<16x8xf32> to vector<2x8x8xf32>
    %52 = vector.extract_strided_slice %20 {offsets = [0, 112], sizes = [16, 8], strides = [1, 1]} : vector<16x128xf32> to vector<16x8xf32>
    %53 = vector.shape_cast %52 : vector<16x8xf32> to vector<2x8x8xf32>
    %54 = vector.extract_strided_slice %20 {offsets = [0, 120], sizes = [16, 8], strides = [1, 1]} : vector<16x128xf32> to vector<16x8xf32>
    %55 = vector.shape_cast %54 : vector<16x8xf32> to vector<2x8x8xf32>
    %56 = vector.shape_cast %25 : vector<2x8x8xf32> to vector<2x1x8x8xf32>
    %57 = vector.shape_cast %27 : vector<2x8x8xf32> to vector<2x1x8x8xf32>
    %58 = vector.shape_cast %29 : vector<2x8x8xf32> to vector<2x1x8x8xf32>
    %59 = vector.shape_cast %31 : vector<2x8x8xf32> to vector<2x1x8x8xf32>
    %60 = vector.shape_cast %33 : vector<2x8x8xf32> to vector<2x1x8x8xf32>
    %61 = vector.shape_cast %35 : vector<2x8x8xf32> to vector<2x1x8x8xf32>
    %62 = vector.shape_cast %37 : vector<2x8x8xf32> to vector<2x1x8x8xf32>
    %63 = vector.shape_cast %39 : vector<2x8x8xf32> to vector<2x1x8x8xf32>
    %64 = vector.shape_cast %41 : vector<2x8x8xf32> to vector<2x1x8x8xf32>
    %65 = vector.shape_cast %43 : vector<2x8x8xf32> to vector<2x1x8x8xf32>
    %66 = vector.shape_cast %45 : vector<2x8x8xf32> to vector<2x1x8x8xf32>
    %67 = vector.shape_cast %47 : vector<2x8x8xf32> to vector<2x1x8x8xf32>
    %68 = vector.shape_cast %49 : vector<2x8x8xf32> to vector<2x1x8x8xf32>
    %69 = vector.shape_cast %51 : vector<2x8x8xf32> to vector<2x1x8x8xf32>
    %70 = vector.shape_cast %53 : vector<2x8x8xf32> to vector<2x1x8x8xf32>
    %71 = vector.shape_cast %55 : vector<2x8x8xf32> to vector<2x1x8x8xf32>
    %72 = tpu.concatenate %56, %57, %58, %59, %60, %61, %62, %63, %64, %65, %66, %67, %68, %69, %70, %71 in 1 : vector<2x1x8x8xf32>, vector<2x1x8x8xf32>, vector<2x1x8x8xf32>, vector<2x1x8x8xf32>, vector<2x1x8x8xf32>, vector<2x1x8x8xf32>, vector<2x1x8x8xf32>, vector<2x1x8x8xf32>, vector<2x1x8x8xf32>, vector<2x1x8x8xf32>, vector<2x1x8x8xf32>, vector<2x1x8x8xf32>, vector<2x1x8x8xf32>, vector<2x1x8x8xf32>, vector<2x1x8x8xf32>, vector<2x1x8x8xf32> -> vector<2x16x8x8xf32>
    %73 = vector.shape_cast %72 : vector<2x16x8x8xf32> to vector<32x8x8xf32>
    %74 = vector.extract_strided_slice %23 {offsets = [0, 0], sizes = [16, 8], strides = [1, 1]} : vector<16x128xf32> to vector<16x8xf32>
    %75 = vector.shape_cast %74 : vector<16x8xf32> to vector<2x8x8xf32>
    %76 = vector.extract_strided_slice %23 {offsets = [0, 8], sizes = [16, 8], strides = [1, 1]} : vector<16x128xf32> to vector<16x8xf32>
    %77 = vector.shape_cast %76 : vector<16x8xf32> to vector<2x8x8xf32>
    %78 = vector.extract_strided_slice %23 {offsets = [0, 16], sizes = [16, 8], strides = [1, 1]} : vector<16x128xf32> to vector<16x8xf32>
    %79 = vector.shape_cast %78 : vector<16x8xf32> to vector<2x8x8xf32>
    %80 = vector.extract_strided_slice %23 {offsets = [0, 24], sizes = [16, 8], strides = [1, 1]} : vector<16x128xf32> to vector<16x8xf32>
    %81 = vector.shape_cast %80 : vector<16x8xf32> to vector<2x8x8xf32>
    %82 = vector.extract_strided_slice %23 {offsets = [0, 32], sizes = [16, 8], strides = [1, 1]} : vector<16x128xf32> to vector<16x8xf32>
    %83 = vector.shape_cast %82 : vector<16x8xf32> to vector<2x8x8xf32>
    %84 = vector.extract_strided_slice %23 {offsets = [0, 40], sizes = [16, 8], strides = [1, 1]} : vector<16x128xf32> to vector<16x8xf32>
    %85 = vector.shape_cast %84 : vector<16x8xf32> to vector<2x8x8xf32>
    %86 = vector.extract_strided_slice %23 {offsets = [0, 48], sizes = [16, 8], strides = [1, 1]} : vector<16x128xf32> to vector<16x8xf32>
    %87 = vector.shape_cast %86 : vector<16x8xf32> to vector<2x8x8xf32>
    %88 = vector.extract_strided_slice %23 {offsets = [0, 56], sizes = [16, 8], strides = [1, 1]} : vector<16x128xf32> to vector<16x8xf32>
    %89 = vector.shape_cast %88 : vector<16x8xf32> to vector<2x8x8xf32>
    %90 = vector.extract_strided_slice %23 {offsets = [0, 64], sizes = [16, 8], strides = [1, 1]} : vector<16x128xf32> to vector<16x8xf32>
    %91 = vector.shape_cast %90 : vector<16x8xf32> to vector<2x8x8xf32>
    %92 = vector.extract_strided_slice %23 {offsets = [0, 72], sizes = [16, 8], strides = [1, 1]} : vector<16x128xf32> to vector<16x8xf32>
    %93 = vector.shape_cast %92 : vector<16x8xf32> to vector<2x8x8xf32>
    %94 = vector.extract_strided_slice %23 {offsets = [0, 80], sizes = [16, 8], strides = [1, 1]} : vector<16x128xf32> to vector<16x8xf32>
    %95 = vector.shape_cast %94 : vector<16x8xf32> to vector<2x8x8xf32>
    %96 = vector.extract_strided_slice %23 {offsets = [0, 88], sizes = [16, 8], strides = [1, 1]} : vector<16x128xf32> to vector<16x8xf32>
    %97 = vector.shape_cast %96 : vector<16x8xf32> to vector<2x8x8xf32>
    %98 = vector.extract_strided_slice %23 {offsets = [0, 96], sizes = [16, 8], strides = [1, 1]} : vector<16x128xf32> to vector<16x8xf32>
    %99 = vector.shape_cast %98 : vector<16x8xf32> to vector<2x8x8xf32>
    %100 = vector.extract_strided_slice %23 {offsets = [0, 104], sizes = [16, 8], strides = [1, 1]} : vector<16x128xf32> to vector<16x8xf32>
    %101 = vector.shape_cast %100 : vector<16x8xf32> to vector<2x8x8xf32>
    %102 = vector.extract_strided_slice %23 {offsets = [0, 112], sizes = [16, 8], strides = [1, 1]} : vector<16x128xf32> to vector<16x8xf32>
    %103 = vector.shape_cast %102 : vector<16x8xf32> to vector<2x8x8xf32>
    %104 = vector.extract_strided_slice %23 {offsets = [0, 120], sizes = [16, 8], strides = [1, 1]} : vector<16x128xf32> to vector<16x8xf32>
    %105 = vector.shape_cast %104 : vector<16x8xf32> to vector<2x8x8xf32>
    %106 = vector.shape_cast %75 : vector<2x8x8xf32> to vector<2x1x8x8xf32>
    %107 = vector.shape_cast %77 : vector<2x8x8xf32> to vector<2x1x8x8xf32>
    %108 = vector.shape_cast %79 : vector<2x8x8xf32> to vector<2x1x8x8xf32>
    %109 = vector.shape_cast %81 : vector<2x8x8xf32> to vector<2x1x8x8xf32>
    %110 = vector.shape_cast %83 : vector<2x8x8xf32> to vector<2x1x8x8xf32>
    %111 = vector.shape_cast %85 : vector<2x8x8xf32> to vector<2x1x8x8xf32>
    %112 = vector.shape_cast %87 : vector<2x8x8xf32> to vector<2x1x8x8xf32>
    %113 = vector.shape_cast %89 : vector<2x8x8xf32> to vector<2x1x8x8xf32>
    %114 = vector.shape_cast %91 : vector<2x8x8xf32> to vector<2x1x8x8xf32>
    %115 = vector.shape_cast %93 : vector<2x8x8xf32> to vector<2x1x8x8xf32>
    %116 = vector.shape_cast %95 : vector<2x8x8xf32> to vector<2x1x8x8xf32>
    %117 = vector.shape_cast %97 : vector<2x8x8xf32> to vector<2x1x8x8xf32>
    %118 = vector.shape_cast %99 : vector<2x8x8xf32> to vector<2x1x8x8xf32>
    %119 = vector.shape_cast %101 : vector<2x8x8xf32> to vector<2x1x8x8xf32>
    %120 = vector.shape_cast %103 : vector<2x8x8xf32> to vector<2x1x8x8xf32>
    %121 = vector.shape_cast %105 : vector<2x8x8xf32> to vector<2x1x8x8xf32>
    %122 = tpu.concatenate %106, %107, %108, %109, %110, %111, %112, %113, %114, %115, %116, %117, %118, %119, %120, %121 in 1 : vector<2x1x8x8xf32>, vector<2x1x8x8xf32>, vector<2x1x8x8xf32>, vector<2x1x8x8xf32>, vector<2x1x8x8xf32>, vector<2x1x8x8xf32>, vector<2x1x8x8xf32>, vector<2x1x8x8xf32>, vector<2x1x8x8xf32>, vector<2x1x8x8xf32>, vector<2x1x8x8xf32>, vector<2x1x8x8xf32>, vector<2x1x8x8xf32>, vector<2x1x8x8xf32>, vector<2x1x8x8xf32>, vector<2x1x8x8xf32> -> vector<2x16x8x8xf32>
    %123 = vector.shape_cast %122 : vector<2x16x8x8xf32> to vector<32x8x8xf32>
    %124 = vector.extract_strided_slice %17 {offsets = [0, 0], sizes = [16, 8], strides = [1, 1]} : vector<16x128xf32> to vector<16x8xf32>
    %125 = vector.shape_cast %124 : vector<16x8xf32> to vector<2x8x8xf32>
    %126 = vector.extract_strided_slice %17 {offsets = [0, 8], sizes = [16, 8], strides = [1, 1]} : vector<16x128xf32> to vector<16x8xf32>
    %127 = vector.shape_cast %126 : vector<16x8xf32> to vector<2x8x8xf32>
    %128 = vector.extract_strided_slice %17 {offsets = [0, 16], sizes = [16, 8], strides = [1, 1]} : vector<16x128xf32> to vector<16x8xf32>
    %129 = vector.shape_cast %128 : vector<16x8xf32> to vector<2x8x8xf32>
    %130 = vector.extract_strided_slice %17 {offsets = [0, 24], sizes = [16, 8], strides = [1, 1]} : vector<16x128xf32> to vector<16x8xf32>
    %131 = vector.shape_cast %130 : vector<16x8xf32> to vector<2x8x8xf32>
    %132 = vector.extract_strided_slice %17 {offsets = [0, 32], sizes = [16, 8], strides = [1, 1]} : vector<16x128xf32> to vector<16x8xf32>
    %133 = vector.shape_cast %132 : vector<16x8xf32> to vector<2x8x8xf32>
    %134 = vector.extract_strided_slice %17 {offsets = [0, 40], sizes = [16, 8], strides = [1, 1]} : vector<16x128xf32> to vector<16x8xf32>
    %135 = vector.shape_cast %134 : vector<16x8xf32> to vector<2x8x8xf32>
    %136 = vector.extract_strided_slice %17 {offsets = [0, 48], sizes = [16, 8], strides = [1, 1]} : vector<16x128xf32> to vector<16x8xf32>
    %137 = vector.shape_cast %136 : vector<16x8xf32> to vector<2x8x8xf32>
    %138 = vector.extract_strided_slice %17 {offsets = [0, 56], sizes = [16, 8], strides = [1, 1]} : vector<16x128xf32> to vector<16x8xf32>
    %139 = vector.shape_cast %138 : vector<16x8xf32> to vector<2x8x8xf32>
    %140 = vector.extract_strided_slice %17 {offsets = [0, 64], sizes = [16, 8], strides = [1, 1]} : vector<16x128xf32> to vector<16x8xf32>
    %141 = vector.shape_cast %140 : vector<16x8xf32> to vector<2x8x8xf32>
    %142 = vector.extract_strided_slice %17 {offsets = [0, 72], sizes = [16, 8], strides = [1, 1]} : vector<16x128xf32> to vector<16x8xf32>
    %143 = vector.shape_cast %142 : vector<16x8xf32> to vector<2x8x8xf32>
    %144 = vector.extract_strided_slice %17 {offsets = [0, 80], sizes = [16, 8], strides = [1, 1]} : vector<16x128xf32> to vector<16x8xf32>
    %145 = vector.shape_cast %144 : vector<16x8xf32> to vector<2x8x8xf32>
    %146 = vector.extract_strided_slice %17 {offsets = [0, 88], sizes = [16, 8], strides = [1, 1]} : vector<16x128xf32> to vector<16x8xf32>
    %147 = vector.shape_cast %146 : vector<16x8xf32> to vector<2x8x8xf32>
    %148 = vector.extract_strided_slice %17 {offsets = [0, 96], sizes = [16, 8], strides = [1, 1]} : vector<16x128xf32> to vector<16x8xf32>
    %149 = vector.shape_cast %148 : vector<16x8xf32> to vector<2x8x8xf32>
    %150 = vector.extract_strided_slice %17 {offsets = [0, 104], sizes = [16, 8], strides = [1, 1]} : vector<16x128xf32> to vector<16x8xf32>
    %151 = vector.shape_cast %150 : vector<16x8xf32> to vector<2x8x8xf32>
    %152 = vector.extract_strided_slice %17 {offsets = [0, 112], sizes = [16, 8], strides = [1, 1]} : vector<16x128xf32> to vector<16x8xf32>
    %153 = vector.shape_cast %152 : vector<16x8xf32> to vector<2x8x8xf32>
    %154 = vector.extract_strided_slice %17 {offsets = [0, 120], sizes = [16, 8], strides = [1, 1]} : vector<16x128xf32> to vector<16x8xf32>
    %155 = vector.shape_cast %154 : vector<16x8xf32> to vector<2x8x8xf32>
    %156 = vector.shape_cast %125 : vector<2x8x8xf32> to vector<2x1x8x8xf32>
    %157 = vector.shape_cast %127 : vector<2x8x8xf32> to vector<2x1x8x8xf32>
    %158 = vector.shape_cast %129 : vector<2x8x8xf32> to vector<2x1x8x8xf32>
    %159 = vector.shape_cast %131 : vector<2x8x8xf32> to vector<2x1x8x8xf32>
    %160 = vector.shape_cast %133 : vector<2x8x8xf32> to vector<2x1x8x8xf32>
    %161 = vector.shape_cast %135 : vector<2x8x8xf32> to vector<2x1x8x8xf32>
    %162 = vector.shape_cast %137 : vector<2x8x8xf32> to vector<2x1x8x8xf32>
    %163 = vector.shape_cast %139 : vector<2x8x8xf32> to vector<2x1x8x8xf32>
    %164 = vector.shape_cast %141 : vector<2x8x8xf32> to vector<2x1x8x8xf32>
    %165 = vector.shape_cast %143 : vector<2x8x8xf32> to vector<2x1x8x8xf32>
    %166 = vector.shape_cast %145 : vector<2x8x8xf32> to vector<2x1x8x8xf32>
    %167 = vector.shape_cast %147 : vector<2x8x8xf32> to vector<2x1x8x8xf32>
    %168 = vector.shape_cast %149 : vector<2x8x8xf32> to vector<2x1x8x8xf32>
    %169 = vector.shape_cast %151 : vector<2x8x8xf32> to vector<2x1x8x8xf32>
    %170 = vector.shape_cast %153 : vector<2x8x8xf32> to vector<2x1x8x8xf32>
    %171 = vector.shape_cast %155 : vector<2x8x8xf32> to vector<2x1x8x8xf32>
    %172 = tpu.concatenate %156, %157, %158, %159, %160, %161, %162, %163, %164, %165, %166, %167, %168, %169, %170, %171 in 1 : vector<2x1x8x8xf32>, vector<2x1x8x8xf32>, vector<2x1x8x8xf32>, vector<2x1x8x8xf32>, vector<2x1x8x8xf32>, vector<2x1x8x8xf32>, vector<2x1x8x8xf32>, vector<2x1x8x8xf32>, vector<2x1x8x8xf32>, vector<2x1x8x8xf32>, vector<2x1x8x8xf32>, vector<2x1x8x8xf32>, vector<2x1x8x8xf32>, vector<2x1x8x8xf32>, vector<2x1x8x8xf32>, vector<2x1x8x8xf32> -> vector<2x16x8x8xf32>
    %173 = vector.shape_cast %172 : vector<2x16x8x8xf32> to vector<32x8x8xf32>
    "tpu.trace_start"() <{level = 10 : i32, message = "gqd,gkd->gqk"}> : () -> ()
    %cst_12 = arith.constant dense<0.000000e+00> : vector<32x8x8xf32>
    %174 = tpu.matmul %73, %123, %cst_12 {dimension_numbers = #tpu.dot_dimension_numbers<[2], [2], [1], [1], [0, 0, 0, 1, 1, 1], [0], [0]>} : vector<32x8x8xf32>, vector<32x8x8xf32>, vector<32x8x8xf32> -> vector<32x8x8xf32>
    "tpu.trace_stop"() : () -> ()
    %cst_13 = arith.constant dense<0xFF800000> : vector<32x8xf32>
    %175 = vector.multi_reduction <maximumf>, %174, %cst_13 [2] : vector<32x8x8xf32> to vector<32x8xf32>
    %176 = vector.shape_cast %175 : vector<32x8xf32> to vector<32x8x1xf32>
    %177 = vector.broadcast %176 : vector<32x8x1xf32> to vector<32x8x8xf32>
    %178 = arith.subf %174, %177 : vector<32x8x8xf32>
    %179 = math.exp %178 : vector<32x8x8xf32>
    %cst_14 = arith.constant dense<0.000000e+00> : vector<32x8xf32>
    %180 = vector.multi_reduction <add>, %179, %cst_14 [2] : vector<32x8x8xf32> to vector<32x8xf32>
    %181 = vector.shape_cast %180 : vector<32x8xf32> to vector<32x8x1xf32>
    "tpu.trace_start"() <{level = 10 : i32, message = "gqk,gkd->gqd"}> : () -> ()
    %cst_15 = arith.constant dense<0.000000e+00> : vector<32x8x8xf32>
    %182 = tpu.matmul %179, %173, %cst_15 {dimension_numbers = #tpu.dot_dimension_numbers<[2], [1], [1], [2], [0, 0, 0, 1, 1, 2], [0], [0]>} : vector<32x8x8xf32>, vector<32x8x8xf32>, vector<32x8x8xf32> -> vector<32x8x8xf32>
    "tpu.trace_stop"() : () -> ()
    %183 = tpu.reciprocal %181 : vector<32x8x1xf32> -> vector<32x8x1xf32>
    %184 = vector.broadcast %183 : vector<32x8x1xf32> to vector<32x8x8xf32>
    %185 = arith.mulf %182, %184 : vector<32x8x8xf32>
    %186 = vector.shape_cast %185 : vector<32x8x8xf32> to vector<2x16x8x8xf32>
    %187 = vector.extract_strided_slice %186 {offsets = [0, 0, 0, 0], sizes = [2, 1, 8, 8], strides = [1, 1, 1, 1]} : vector<2x16x8x8xf32> to vector<2x1x8x8xf32>
    %188 = vector.shape_cast %187 : vector<2x1x8x8xf32> to vector<2x8x8xf32>
    %c0_16 = arith.constant 0 : index
    %c0_17 = arith.constant 0 : index
    %c0_18 = arith.constant 0 : index
    %189 = vector.load %arg8[%c0_16, %c0_17, %c0_18] : memref<2x8x128xf32, #tpu.memory_space<vmem>>, vector<2x8x8xf32>
    tpu.vector_store %arg8[%c0_16, %c0_17, %c0_18], %188 {strides = array<i32>} : memref<2x8x128xf32, #tpu.memory_space<vmem>>, vector<2x8x8xf32>,
    %190 = vector.extract_strided_slice %186 {offsets = [0, 1, 0, 0], sizes = [2, 1, 8, 8], strides = [1, 1, 1, 1]} : vector<2x16x8x8xf32> to vector<2x1x8x8xf32>
    %191 = vector.shape_cast %190 : vector<2x1x8x8xf32> to vector<2x8x8xf32>
    %c0_19 = arith.constant 0 : index
    %c0_20 = arith.constant 0 : index
    %c8 = arith.constant 8 : index
    %192 = vector.load %arg8[%c0_19, %c0_20, %c8] : memref<2x8x128xf32, #tpu.memory_space<vmem>>, vector<2x8x8xf32>
    tpu.vector_store %arg8[%c0_19, %c0_20, %c8], %191 {strides = array<i32>} : memref<2x8x128xf32, #tpu.memory_space<vmem>>, vector<2x8x8xf32>,
    %193 = vector.extract_strided_slice %186 {offsets = [0, 2, 0, 0], sizes = [2, 1, 8, 8], strides = [1, 1, 1, 1]} : vector<2x16x8x8xf32> to vector<2x1x8x8xf32>
    %194 = vector.shape_cast %193 : vector<2x1x8x8xf32> to vector<2x8x8xf32>
    %c0_21 = arith.constant 0 : index
    %c0_22 = arith.constant 0 : index
    %c16 = arith.constant 16 : index
    %195 = vector.load %arg8[%c0_21, %c0_22, %c16] : memref<2x8x128xf32, #tpu.memory_space<vmem>>, vector<2x8x8xf32>
    tpu.vector_store %arg8[%c0_21, %c0_22, %c16], %194 {strides = array<i32>} : memref<2x8x128xf32, #tpu.memory_space<vmem>>, vector<2x8x8xf32>,
    %196 = vector.extract_strided_slice %186 {offsets = [0, 3, 0, 0], sizes = [2, 1, 8, 8], strides = [1, 1, 1, 1]} : vector<2x16x8x8xf32> to vector<2x1x8x8xf32>
    %197 = vector.shape_cast %196 : vector<2x1x8x8xf32> to vector<2x8x8xf32>
    %c0_23 = arith.constant 0 : index
    %c0_24 = arith.constant 0 : index
    %c24 = arith.constant 24 : index
    %198 = vector.load %arg8[%c0_23, %c0_24, %c24] : memref<2x8x128xf32, #tpu.memory_space<vmem>>, vector<2x8x8xf32>
    tpu.vector_store %arg8[%c0_23, %c0_24, %c24], %197 {strides = array<i32>} : memref<2x8x128xf32, #tpu.memory_space<vmem>>, vector<2x8x8xf32>,
    %199 = vector.extract_strided_slice %186 {offsets = [0, 4, 0, 0], sizes = [2, 1, 8, 8], strides = [1, 1, 1, 1]} : vector<2x16x8x8xf32> to vector<2x1x8x8xf32>
    %200 = vector.shape_cast %199 : vector<2x1x8x8xf32> to vector<2x8x8xf32>
    %c0_25 = arith.constant 0 : index
    %c0_26 = arith.constant 0 : index
    %c32 = arith.constant 32 : index
    %201 = vector.load %arg8[%c0_25, %c0_26, %c32] : memref<2x8x128xf32, #tpu.memory_space<vmem>>, vector<2x8x8xf32>
    tpu.vector_store %arg8[%c0_25, %c0_26, %c32], %200 {strides = array<i32>} : memref<2x8x128xf32, #tpu.memory_space<vmem>>, vector<2x8x8xf32>,
    %202 = vector.extract_strided_slice %186 {offsets = [0, 5, 0, 0], sizes = [2, 1, 8, 8], strides = [1, 1, 1, 1]} : vector<2x16x8x8xf32> to vector<2x1x8x8xf32>
    %203 = vector.shape_cast %202 : vector<2x1x8x8xf32> to vector<2x8x8xf32>
    %c0_27 = arith.constant 0 : index
    %c0_28 = arith.constant 0 : index
    %c40 = arith.constant 40 : index
    %204 = vector.load %arg8[%c0_27, %c0_28, %c40] : memref<2x8x128xf32, #tpu.memory_space<vmem>>, vector<2x8x8xf32>
    tpu.vector_store %arg8[%c0_27, %c0_28, %c40], %203 {strides = array<i32>} : memref<2x8x128xf32, #tpu.memory_space<vmem>>, vector<2x8x8xf32>,
    %205 = vector.extract_strided_slice %186 {offsets = [0, 6, 0, 0], sizes = [2, 1, 8, 8], strides = [1, 1, 1, 1]} : vector<2x16x8x8xf32> to vector<2x1x8x8xf32>
    %206 = vector.shape_cast %205 : vector<2x1x8x8xf32> to vector<2x8x8xf32>
    %c0_29 = arith.constant 0 : index
    %c0_30 = arith.constant 0 : index
    %c48 = arith.constant 48 : index
    %207 = vector.load %arg8[%c0_29, %c0_30, %c48] : memref<2x8x128xf32, #tpu.memory_space<vmem>>, vector<2x8x8xf32>
    tpu.vector_store %arg8[%c0_29, %c0_30, %c48], %206 {strides = array<i32>} : memref<2x8x128xf32, #tpu.memory_space<vmem>>, vector<2x8x8xf32>,
    %208 = vector.extract_strided_slice %186 {offsets = [0, 7, 0, 0], sizes = [2, 1, 8, 8], strides = [1, 1, 1, 1]} : vector<2x16x8x8xf32> to vector<2x1x8x8xf32>
    %209 = vector.shape_cast %208 : vector<2x1x8x8xf32> to vector<2x8x8xf32>
    %c0_31 = arith.constant 0 : index
    %c0_32 = arith.constant 0 : index
    %c56 = arith.constant 56 : index
    %210 = vector.load %arg8[%c0_31, %c0_32, %c56] : memref<2x8x128xf32, #tpu.memory_space<vmem>>, vector<2x8x8xf32>
    tpu.vector_store %arg8[%c0_31, %c0_32, %c56], %209 {strides = array<i32>} : memref<2x8x128xf32, #tpu.memory_space<vmem>>, vector<2x8x8xf32>,
    %211 = vector.extract_strided_slice %186 {offsets = [0, 8, 0, 0], sizes = [2, 1, 8, 8], strides = [1, 1, 1, 1]} : vector<2x16x8x8xf32> to vector<2x1x8x8xf32>
    %212 = vector.shape_cast %211 : vector<2x1x8x8xf32> to vector<2x8x8xf32>
    %c0_33 = arith.constant 0 : index
    %c0_34 = arith.constant 0 : index
    %c64 = arith.constant 64 : index
    %213 = vector.load %arg8[%c0_33, %c0_34, %c64] : memref<2x8x128xf32, #tpu.memory_space<vmem>>, vector<2x8x8xf32>
    tpu.vector_store %arg8[%c0_33, %c0_34, %c64], %212 {strides = array<i32>} : memref<2x8x128xf32, #tpu.memory_space<vmem>>, vector<2x8x8xf32>,
    %214 = vector.extract_strided_slice %186 {offsets = [0, 9, 0, 0], sizes = [2, 1, 8, 8], strides = [1, 1, 1, 1]} : vector<2x16x8x8xf32> to vector<2x1x8x8xf32>
    %215 = vector.shape_cast %214 : vector<2x1x8x8xf32> to vector<2x8x8xf32>
    %c0_35 = arith.constant 0 : index
    %c0_36 = arith.constant 0 : index
    %c72 = arith.constant 72 : index
    %216 = vector.load %arg8[%c0_35, %c0_36, %c72] : memref<2x8x128xf32, #tpu.memory_space<vmem>>, vector<2x8x8xf32>
    tpu.vector_store %arg8[%c0_35, %c0_36, %c72], %215 {strides = array<i32>} : memref<2x8x128xf32, #tpu.memory_space<vmem>>, vector<2x8x8xf32>,
    %217 = vector.extract_strided_slice %186 {offsets = [0, 10, 0, 0], sizes = [2, 1, 8, 8], strides = [1, 1, 1, 1]} : vector<2x16x8x8xf32> to vector<2x1x8x8xf32>
    %218 = vector.shape_cast %217 : vector<2x1x8x8xf32> to vector<2x8x8xf32>
    %c0_37 = arith.constant 0 : index
    %c0_38 = arith.constant 0 : index
    %c80 = arith.constant 80 : index
    %219 = vector.load %arg8[%c0_37, %c0_38, %c80] : memref<2x8x128xf32, #tpu.memory_space<vmem>>, vector<2x8x8xf32>
    tpu.vector_store %arg8[%c0_37, %c0_38, %c80], %218 {strides = array<i32>} : memref<2x8x128xf32, #tpu.memory_space<vmem>>, vector<2x8x8xf32>,
    %220 = vector.extract_strided_slice %186 {offsets = [0, 11, 0, 0], sizes = [2, 1, 8, 8], strides = [1, 1, 1, 1]} : vector<2x16x8x8xf32> to vector<2x1x8x8xf32>
    %221 = vector.shape_cast %220 : vector<2x1x8x8xf32> to vector<2x8x8xf32>
    %c0_39 = arith.constant 0 : index
    %c0_40 = arith.constant 0 : index
    %c88 = arith.constant 88 : index
    %222 = vector.load %arg8[%c0_39, %c0_40, %c88] : memref<2x8x128xf32, #tpu.memory_space<vmem>>, vector<2x8x8xf32>
    tpu.vector_store %arg8[%c0_39, %c0_40, %c88], %221 {strides = array<i32>} : memref<2x8x128xf32, #tpu.memory_space<vmem>>, vector<2x8x8xf32>,
    %223 = vector.extract_strided_slice %186 {offsets = [0, 12, 0, 0], sizes = [2, 1, 8, 8], strides = [1, 1, 1, 1]} : vector<2x16x8x8xf32> to vector<2x1x8x8xf32>
    %224 = vector.shape_cast %223 : vector<2x1x8x8xf32> to vector<2x8x8xf32>
    %c0_41 = arith.constant 0 : index
    %c0_42 = arith.constant 0 : index
    %c96 = arith.constant 96 : index
    %225 = vector.load %arg8[%c0_41, %c0_42, %c96] : memref<2x8x128xf32, #tpu.memory_space<vmem>>, vector<2x8x8xf32>
    tpu.vector_store %arg8[%c0_41, %c0_42, %c96], %224 {strides = array<i32>} : memref<2x8x128xf32, #tpu.memory_space<vmem>>, vector<2x8x8xf32>,
    %226 = vector.extract_strided_slice %186 {offsets = [0, 13, 0, 0], sizes = [2, 1, 8, 8], strides = [1, 1, 1, 1]} : vector<2x16x8x8xf32> to vector<2x1x8x8xf32>
    %227 = vector.shape_cast %226 : vector<2x1x8x8xf32> to vector<2x8x8xf32>
    %c0_43 = arith.constant 0 : index
    %c0_44 = arith.constant 0 : index
    %c104 = arith.constant 104 : index
    %228 = vector.load %arg8[%c0_43, %c0_44, %c104] : memref<2x8x128xf32, #tpu.memory_space<vmem>>, vector<2x8x8xf32>
    tpu.vector_store %arg8[%c0_43, %c0_44, %c104], %227 {strides = array<i32>} : memref<2x8x128xf32, #tpu.memory_space<vmem>>, vector<2x8x8xf32>,
    %229 = vector.extract_strided_slice %186 {offsets = [0, 14, 0, 0], sizes = [2, 1, 8, 8], strides = [1, 1, 1, 1]} : vector<2x16x8x8xf32> to vector<2x1x8x8xf32>
    %230 = vector.shape_cast %229 : vector<2x1x8x8xf32> to vector<2x8x8xf32>
    %c0_45 = arith.constant 0 : index
    %c0_46 = arith.constant 0 : index
    %c112 = arith.constant 112 : index
    %231 = vector.load %arg8[%c0_45, %c0_46, %c112] : memref<2x8x128xf32, #tpu.memory_space<vmem>>, vector<2x8x8xf32>
    tpu.vector_store %arg8[%c0_45, %c0_46, %c112], %230 {strides = array<i32>} : memref<2x8x128xf32, #tpu.memory_space<vmem>>, vector<2x8x8xf32>,
    %232 = vector.extract_strided_slice %186 {offsets = [0, 15, 0, 0], sizes = [2, 1, 8, 8], strides = [1, 1, 1, 1]} : vector<2x16x8x8xf32> to vector<2x1x8x8xf32>
    %233 = vector.shape_cast %232 : vector<2x1x8x8xf32> to vector<2x8x8xf32>
    %c0_47 = arith.constant 0 : index
    %c0_48 = arith.constant 0 : index
    %c120 = arith.constant 120 : index
    %234 = vector.load %arg8[%c0_47, %c0_48, %c120] : memref<2x8x128xf32, #tpu.memory_space<vmem>>, vector<2x8x8xf32>
    tpu.vector_store %arg8[%c0_47, %c0_48, %c120], %233 {strides = array<i32>} : memref<2x8x128xf32, #tpu.memory_space<vmem>>, vector<2x8x8xf32>,
    %c0_49 = arith.constant 0 : index
    %c0_50 = arith.constant 0 : index
    %c0_51 = arith.constant 0 : index
    %235 = vector.load %arg8[%c0_49, %c0_50, %c0_51] : memref<2x8x128xf32, #tpu.memory_space<vmem>>, vector<2x8x128xf32>
    %236 = vector.shape_cast %235 : vector<2x8x128xf32> to vector<16x128xf32>
    %c0_52 = arith.constant 0 : index
    %c0_53 = arith.constant 0 : index
    %237 = vector.load %arg5[%c0_52, %c0_53] : memref<128x128xf32, #tpu.memory_space<vmem>>, vector<128x128xf32>
    %cst_54 = arith.constant dense<0.000000e+00> : vector<16x128xf32>
    %238 = tpu.matmul %236, %237, %cst_54 {dimension_numbers = #tpu.dot_dimension_numbers<[1], [0], [0], [1], [0, 0, 1, 1], [], []>} : vector<16x128xf32>, vector<128x128xf32>, vector<16x128xf32> -> vector<16x128xf32>
    %239 = vector.broadcast %9 : vector<1x128xf32> to vector<16x128xf32>
    %240 = arith.addf %238, %239 : vector<16x128xf32>
    %241 = arith.addf %3, %240 : vector<16x128xf32>
    %cst_55 = arith.constant dense<0.000000e+00> : vector<16xf32>
    %242 = vector.multi_reduction <add>, %241, %cst_55 [1] : vector<16x128xf32> to vector<16xf32>
    %243 = vector.shape_cast %242 : vector<16xf32> to vector<16x1xf32>
    %cst_56 = arith.constant 3.125000e-02 : f32
    %244 = vector.broadcast %cst_56 : f32 to vector<16x1xf32>
    %245 = arith.mulf %243, %244 : vector<16x1xf32>
    %246 = vector.broadcast %245 : vector<16x1xf32> to vector<16x128xf32>
    %247 = arith.subf %241, %246 : vector<16x128xf32>
    %248 = tpu.iota {dimensions = array<i32: 1>} : vector<1x128xi32>
    %c32_i32 = arith.constant 32 : i32
    %249 = vector.broadcast %c32_i32 : i32 to vector<1x128xi32>
    %250 = arith.cmpi slt, %248, %249 : vector<1x128xi32>
    %cst_57 = arith.constant 0.000000e+00 : f32
    %251 = vector.shape_cast %250 : vector<1x128xi1> to vector<1x128xi1>
    %252 = vector.broadcast %251 : vector<1x128xi1> to vector<16x128xi1>
    %253 = vector.broadcast %cst_57 : f32 to vector<16x128xf32>
    %254 = arith.select %252, %247, %253 : vector<16x128xi1>, vector<16x128xf32>
    %255 = arith.mulf %254, %254 : vector<16x128xf32>
    %cst_58 = arith.constant dense<0.000000e+00> : vector<16xf32>
    %256 = vector.multi_reduction <add>, %255, %cst_58 [1] : vector<16x128xf32> to vector<16xf32>
    %257 = vector.shape_cast %256 : vector<16xf32> to vector<16x1xf32>
    %cst_59 = arith.constant 3.125000e-02 : f32
    %258 = vector.broadcast %cst_59 : f32 to vector<16x1xf32>
    %259 = arith.mulf %257, %258 : vector<16x1xf32>
    %cst_60 = arith.constant 9.99999974E-6 : f32
    %260 = vector.broadcast %cst_60 : f32 to vector<16x1xf32>
    %261 = arith.addf %259, %260 : vector<16x1xf32>
    %262 = math.rsqrt %261 : vector<16x1xf32>
    %263 = vector.broadcast %262 : vector<16x1xf32> to vector<16x128xf32>
    %264 = arith.mulf %254, %263 : vector<16x128xf32>
    %265 = vector.broadcast %10 : vector<1x128xf32> to vector<16x128xf32>
    %266 = arith.mulf %264, %265 : vector<16x128xf32>
    %267 = vector.broadcast %11 : vector<1x128xf32> to vector<16x128xf32>
    %268 = arith.addf %266, %267 : vector<16x128xf32>
    %269 = vector.shape_cast %268 : vector<16x128xf32> to vector<2x8x128xf32>
    %c0_61 = arith.constant 0 : index
    %c0_62 = arith.constant 0 : index
    %c0_63 = arith.constant 0 : index
    %270 = vector.load %arg7[%c0_61, %c0_62, %c0_63] : memref<2x8x128xf32, #tpu.memory_space<vmem>>, vector<2x8x128xf32>
    tpu.vector_store %arg7[%c0_61, %c0_62, %c0_63], %269 {strides = array<i32>} : memref<2x8x128xf32, #tpu.memory_space<vmem>>, vector<2x8x128xf32>,
    return
  }
  func.func @transform_0(%arg0: i32) -> (i32, i32, i32) {
    %c0_i32 = arith.constant 0 : i32
    %c0_i32_0 = arith.constant 0 : i32
    %c0_i32_1 = arith.constant 0 : i32
    return %arg0, %c0_i32, %c0_i32_0 : i32, i32, i32
  }
  func.func @transform_1(%arg0: i32) -> (i32, i32, i32) {
    %c0_i32 = arith.constant 0 : i32
    %c0_i32_0 = arith.constant 0 : i32
    %c0_i32_1 = arith.constant 0 : i32
    return %arg0, %c0_i32, %c0_i32_0 : i32, i32, i32
  }
  func.func @transform_2(%arg0: i32) -> (i32, i32) {
    %c0_i32 = arith.constant 0 : i32
    %c0_i32_0 = arith.constant 0 : i32
    %c0_i32_1 = arith.constant 0 : i32
    return %c0_i32, %c0_i32_0 : i32, i32
  }
  func.func @transform_3(%arg0: i32) -> (i32, i32) {
    %c0_i32 = arith.constant 0 : i32
    %c0_i32_0 = arith.constant 0 : i32
    %c0_i32_1 = arith.constant 0 : i32
    return %c0_i32, %c0_i32_0 : i32, i32
  }
  func.func @transform_4(%arg0: i32) -> (i32, i32) {
    %c0_i32 = arith.constant 0 : i32
    %c0_i32_0 = arith.constant 0 : i32
    %c0_i32_1 = arith.constant 0 : i32
    return %c0_i32, %c0_i32_0 : i32, i32
  }
  func.func @transform_5(%arg0: i32) -> (i32, i32) {
    %c0_i32 = arith.constant 0 : i32
    %c0_i32_0 = arith.constant 0 : i32
    %c0_i32_1 = arith.constant 0 : i32
    return %c0_i32, %c0_i32_0 : i32, i32
  }
  func.func @transform_6(%arg0: i32) -> (i32, i32, i32) {
    %c0_i32 = arith.constant 0 : i32
    %c0_i32_0 = arith.constant 0 : i32
    %c0_i32_1 = arith.constant 0 : i32
    return %arg0, %c0_i32, %c0_i32_0 : i32, i32, i32
  }
}

</mosaic_0001>

<bundles_post_ra>
// kernel: self_attention_layer.1
= control target key start
LH: loop header
LB: loop body
LE: loop exit
PB: predicated region body
PF: predicated region fallthrough
CT: control target
= control target key end

     0   :  { %11 = vsyncpa [#allocation4], 0  ;;  %s7967_s0 = inlined_call_operand.vmem [shape: f32[2,8,128], index: 0, kind: input, shape index: {}]   ;;  %s7968_s1 = inlined_call_operand.vmem [shape: f32[2,8,128], index: 1, kind: input, shape index: {}]   ;;  %s7969_s2 = inlined_call_operand.hbm [shape: f32[128,256], index: 2, kind: input, shape index: {}]   ;;  %s7970_s3 = inlined_call_operand.hbm [shape: f32[128,128], index: 3, kind: input, shape index: {}]   ;;  %s7971_s4 = inlined_call_operand.hbm [shape: f32[128,128], index: 4, kind: input, shape index: {}]   ;;  %s7972_s5 = inlined_call_operand.vmem [shape: f32[8,128], index: 5, kind: input, shape index: {}]   ;;  %s7973_s6 = inlined_call_operand.hbm [shape: f32[2,8,128], index: 6, kind: output, shape index: {}]  }
   0x1   :  { %12 = vsyncpa [#allocation7], 0 }
   0x2   :  { %13 = vsyncpa [#allocation5], 0  ;;  %s6886_s21 = smov [#allocation6]   ;;  %s6792_s25 = scalar_lea.hbm %s7970_s3, 2048 }
   0x3   :  { %s35_s22 = sshll.u32 %s6886_s21, 4  ;;  %p6793_p0 = scmp.ne.s32.totalorder %s7970_s3, %s6792_s25  ;;  %s36_s22 = int_to_ptr.vmem [resolvable:$true] %s35_s22 }
   0x4   :  { %p6796_p1 = scmp.lt.u32.totalorder %s6792_s25, %s7970_s3 }
   0x6   :  { %p6798_p2 = pnand %p6796_p1, %p6793_p0 }
   0x8   :  { %6801 = shalt.err (!%p6798_p2)
}
   0x9   :  { %s6802_s30 = scalar_lea.vmem %s36_s22, 2048  ;;  %p6807_p4 = scmp.lt.s32.totalorder %s36_s22, %s36_s22 }
   0xa   :  { %p6803_p3 = scmp.ne.s32.totalorder %s36_s22, %s6802_s30  ;;  %p6808_p5 = scmp.lt.s32.totalorder %s6802_s30, %s6802_s30 }
   0xc   :  { %p6809_p6 = por %p6808_p5, %p6807_p4 }
   0xe   :  { %p6810_p7 = pnand %p6809_p6, %p6803_p3 }
  0x10   :  { %6813 = shalt.err (!%p6810_p7)
}
  0x11   :  { %s6887_s7 = smov 128   ;;  %s6888_s8 = smov 8  }
  0x12   :  { %41 = dma.hbm_to_vmem [thread:$0]  %s7970_s3, 2048, %s36_s22, [#allocation7], %s6887_s7, %s6887_s7, %s6888_s8  }
  0x13   :  { %s6889_s11 = smov [#allocation3]   ;;  %s6814_s15 = scalar_lea.hbm %s7969_s2, 4096 }
  0x14   :  { %s23_s12 = sshll.u32 %s6889_s11, 4  ;;  %p6815_p8 = scmp.ne.s32.totalorder %s7969_s2, %s6814_s15  ;;  %s24_s12 = int_to_ptr.vmem [resolvable:$true] %s23_s12 }
  0x15   :  { %p6818_p9 = scmp.lt.u32.totalorder %s6814_s15, %s7969_s2 }
  0x17   :  { %p6820_p10 = pnand %p6818_p9, %p6815_p8 }
  0x19   :  { %6823 = shalt.err (!%p6820_p10)
}
  0x1a   :  { %s6824_s20 = scalar_lea.vmem %s24_s12, 4096  ;;  %p6829_p12 = scmp.lt.s32.totalorder %s24_s12, %s24_s12 }
  0x1b   :  { %p6825_p11 = scmp.ne.s32.totalorder %s24_s12, %s6824_s20  ;;  %p6830_p13 = scmp.lt.s32.totalorder %s6824_s20, %s6824_s20 }
  0x1d   :  { %p6831_p0 = por %p6830_p13, %p6829_p12 }
  0x1f   :  { %p6832_p1 = pnand %p6831_p0, %p6825_p11 }
  0x21   :  { %6835 = shalt.err (!%p6832_p1)
}
  0x22   :  { %s6890_s3 = smov 256   ;;  %s6891_s21 = smov 16  }
  0x23   :  { %29 = dma.hbm_to_vmem [thread:$0]  %s7969_s2, 4096, %s24_s12, [#allocation4], %s6890_s3, %s6890_s3, %s6891_s21  }
  0x24   :  { %s6892_s24 = smov [#allocation8]   ;;  %s6836_s28 = scalar_lea.hbm %s7971_s4, 2048 }
  0x25   :  { %s47_s25 = sshll.u32 %s6892_s24, 4  ;;  %p6837_p2 = scmp.ne.s32.totalorder %s7971_s4, %s6836_s28  ;;  %s48_s25 = int_to_ptr.vmem [resolvable:$true] %s47_s25 }
  0x26   :  { %p6840_p3 = scmp.lt.u32.totalorder %s6836_s28, %s7971_s4 }
  0x28   :  { %p6842_p4 = pnand %p6840_p3, %p6837_p2 }
  0x2a   :  { %6845 = shalt.err (!%p6842_p4)
}
  0x2b   :  { %s6846_s11 = scalar_lea.vmem %s48_s25, 2048  ;;  %p6851_p6 = scmp.lt.s32.totalorder %s48_s25, %s48_s25 }
  0x2c   :  { %p6847_p5 = scmp.ne.s32.totalorder %s48_s25, %s6846_s11  ;;  %p6852_p7 = scmp.lt.s32.totalorder %s6846_s11, %s6846_s11 }
  0x2e   :  { %p6853_p8 = por %p6852_p7, %p6851_p6 }
  0x30   :  { %p6854_p9 = pnand %p6853_p8, %p6847_p5 }
  0x32   :  { %6857 = shalt.err (!%p6854_p9)
}
  0x33   :  { %53 = dma.hbm_to_vmem [thread:$0]  %s7971_s4, 2048, %s48_s25, [#allocation7], %s6887_s7, %s6887_s7, %s6888_s8  }
  0x34   :  { %6880 = dma.done.wait [#allocation4], 4096  }
  0x35   :  { %6881 = vsyncadd [#allocation4], 4294963200 }
  0x36   :  { %6882 = dma.done.wait [#allocation7], 4096  }
  0x37   :  { %6883 = vsyncadd [#allocation7], 4294963200  ;;  %v7975_v0 = vmov 0.0   ;;  %v73_v1 = vld [vmem:[#allocation3 + $0x8] sm:$0xff]  ;;  %v75_v2 = vld [vmem:[#allocation3 + $0x18] sm:$0xff]  ;;  %vm6894_vm0 = vmmov 0  }
  0x38   :  { %168 = vmatprep.mubr.f32.mxu0 %v7975_v0  ;;  %v72_v3 = vld [vmem:[#allocation3] sm:$0xff]  ;;  %v6538_v4 = vpack.c.bf16 %v75_v2, %v73_v1  ;;  %v74_v5 = vld [vmem:[#allocation3 + $0x10] sm:$0xff]  ;;  %v77_v6 = vld [vmem:[#allocation3 + $0x28] sm:$0xff]  ;;  %vm504_vm1 = vcmask 64512   ;;  %s6895_s3 = smov 112   ;;  %s6896_s22 = smov 120  }
  0x39   :  { %v79_v7 = vld [vmem:[#allocation3 + $0x38] sm:$0xff]  ;;  %v6540_v8 = vpack.c.bf16 %v74_v5, %v72_v3  ;;  %v76_v10 = vld [vmem:[#allocation3 + $0x20] sm:$0xff]  ;;  %v78_v11 = vld [vmem:[#allocation3 + $0x30] sm:$0xff]  ;;  %s6897_s23 = smov 104   ;;  %s6898_s24 = smov 80   ;;  %vm5571_vm2 = vcmask 130112  }
  0x3a   :  { %v6542_v9 = vpack.c.bf16 %v79_v7, %v77_v6  ;;  %v81_v12 = vld [vmem:[#allocation3 + $0x48] sm:$0xff]  ;;  %6539 = vmatprep.subr.bf16.mxu0 %v6538_v4  ;;  %v83_v13 = vld [vmem:[#allocation3 + $0x58] sm:$0xff]  ;;  %v6544_v14 = vpack.c.bf16 %v78_v11, %v76_v10  ;;  %v80_v16 = vld [vmem:[#allocation3 + $0x40] sm:$0xff]  ;;  %s6899_s25 = smov 96   ;;  %s6900_s26 = smov 64   ;;  %vm5582_vm3 = vcmask 195712  }
  0x3b   :  { %6541 = vmatpush1.bf16.msra.mxu0 %v6540_v8  ;;  %v6546_v15 = vpack.c.bf16 %v83_v13, %v81_v12  ;;  %v82_v17 = vld [vmem:[#allocation3 + $0x50] sm:$0xff]  ;;  %v85_v18 = vld [vmem:[#allocation3 + $0x68] sm:$0xff]  ;;  %v87_v19 = vld [vmem:[#allocation3 + $0x78] sm:$0xff]  ;;  %s6901_s27 = smov 88   ;;  %s6902_s28 = smov 48   ;;  %vm5593_vm4 = vcmask 261312  }
  0x3c   :  { %6543 = vmatprep.subr.bf16.mxu0 %v6542_v9  ;;  %v6548_v20 = vpack.c.bf16 %v82_v17, %v80_v16  ;;  %v6550_v21 = vpack.c.bf16 %v87_v19, %v85_v18  ;;  %v84_v22 = vld [vmem:[#allocation3 + $0x60] sm:$0xff]  ;;  %v86_v23 = vld [vmem:[#allocation3 + $0x70] sm:$0xff]  ;;  %v89_v24 = vld [vmem:[#allocation3 + $0x88] sm:$0xff]  ;;  %v7974_v16 = vlaneseq  ;;  %s6903_s29 = smov 72   ;;  %s6904_s30 = smov 32   ;;  %vm5604_vm5 = vcmask 326912  }
  0x3d   :  { %v91_v25 = vld [vmem:[#allocation3 + $0x98] sm:$0xff]  ;;  %v6991_v26 = vld [vmem:[%s7967_s0] sm:$0xff]  ;;  %v6552_v28 = vpack.c.bf16 %v86_v23, %v84_v22  ;;  %v182_v30 = vld [vmem:[#allocation6 + $0x8] sm:$0xff]  ;;  %s6905_s9 = smov 56   ;;  %s6906_s10 = smov 40   ;;  %vm5615_vm6 = vcmask 392512  }
  0x3e   :  { %v88_v27 = vld [vmem:[#allocation3 + $0x80] sm:$0xff]  ;;  %6180 = vmatprep.mubr.f32.mxu1 %v6991_v26  ;;  %v183_v31 = vld [vmem:[#allocation6 + $0x10] sm:$0xff]  ;;  %v6554_v32 = vpack.c.bf16 %v91_v25, %v89_v24  ;;  %v93_v34 = vld [vmem:[#allocation3 + $0xa8] sm:$0xff]  ;;  %v7012_v17 = vshrl.u32 %v7974_v16, 7  ;;  %s6907_s11 = smov 24   ;;  %vm5626_vm7 = vcmask 458112  }
  0x3f   :  { %6545 = vmatpush1.bf16.msra.mxu0 %v6544_v14  ;;  %v181_v29 = vld [vmem:[#allocation6] sm:$0xff]  ;;  %v90_v33 = vld [vmem:[#allocation3 + $0x90] sm:$0xff]  ;;  %v184_v36 = vld [vmem:[#allocation6 + $0x18] sm:$0xff]  ;;  %vm5637_vm8 = vcmask 523712   ;;  %vm5648_vm9 = vcmask 589312   ;;  %vm5659_vm10 = vcmask 654912  }
  0x40   :  { %6547 = vmatprep.subr.bf16.mxu0 %v6546_v15  ;;  %v6570_v35 = vpack.c.bf16 %v182_v30, %v181_v29  ;;  %v95_v37 = vld [vmem:[#allocation3 + $0xb8] sm:$0xff]  ;;  %v6574_v38 = vpack.c.bf16 %v184_v36, %v183_v31  ;;  %v185_v39 = vld [vmem:[#allocation6 + $0x20] sm:$0xff]  ;;  %v186_v40 = vld [vmem:[#allocation6 + $0x28] sm:$0xff]  ;;  %v6556_v41 = vpack.c.bf16 %v90_v33, %v88_v27  ;;  %7981 = vst [vmem:[#allocation13_spill] sm:$0xff] %v7012_v17  ;;  %v278_v18 = vsub.s32 0, %v7012_v17 }
  0x41   :  { %v6558_v42 = vpack.c.bf16 %v95_v37, %v93_v34  ;;  %v92_v43 = vld [vmem:[#allocation3 + $0xa0] sm:$0xff]  ;;  %v94_v44 = vld [vmem:[#allocation3 + $0xb0] sm:$0xff]  ;;  %v97_v45 = vld [vmem:[#allocation3 + $0xc8] sm:$0xff]  ;;  %v6578_v46 = vpack.c.bf16 %v186_v40, %v185_v39  ;;  %v199_v33 = vsub.s32 2, %v7012_v17  ;;  %vm5670_vm11 = vcmask 720512  }
  0x42   :  { %6571 = vmatprep.subr.bf16.mxu1 %v6570_v35  ;;  %v99_v47 = vld [vmem:[#allocation3 + $0xd8] sm:$0xff]  ;;  %v187_v48 = vld [vmem:[#allocation6 + $0x30] sm:$0xff]  ;;  %v6560_v50 = vpack.c.bf16 %v94_v44, %v92_v43  ;;  %v96_v52 = vld [vmem:[#allocation3 + $0xc0] sm:$0xff]  ;;  %vm5681_vm12 = vcmask 786112   ;;  %vm5692_vm13 = vcmask 851712   ;;  %vm5703_vm14 = vcmask 917312  }
  0x43   :  { %6549 = vmatpush1.bf16.msra.mxu0 %v6548_v20  ;;  %6573 = vmatpush3.bf16.msra.mxu1 %v6570_v35  ;;  %v188_v49 = vld [vmem:[#allocation6 + $0x38] sm:$0xff]  ;;  %v6562_v51 = vpack.c.bf16 %v99_v47, %v97_v45  ;;  %v98_v53 = vld [vmem:[#allocation3 + $0xd0] sm:$0xff]  ;;  %v101_v54 = vld [vmem:[#allocation3 + $0xe8] sm:$0xff]  ;;  %v284_v20 = vsub.s32 1, %v7012_v17  ;;  %vm5714_vm15 = vcmask 982912  }
  0x44   :  { %6551 = vmatprep.subr.bf16.mxu0 %v6550_v21  ;;  %6575 = vmatprep.subr.bf16.mxu1 %v6574_v38  ;;  %v6582_v55 = vpack.c.bf16 %v188_v49, %v187_v48  ;;  %v103_v56 = vld [vmem:[#allocation3 + $0xf8] sm:$0xff]  ;;  %v189_v57 = vld [vmem:[#allocation6 + $0x40] sm:$0xff]  ;;  %v190_v58 = vld [vmem:[#allocation6 + $0x48] sm:$0xff]  ;;  %v6564_v59 = vpack.c.bf16 %v98_v53, %v96_v52 }
  0x45   :  { %v6566_v60 = vpack.c.bf16 %v103_v56, %v101_v54  ;;  %v100_v61 = vld [vmem:[#allocation3 + $0xe0] sm:$0xff]  ;;  %v102_v62 = vld [vmem:[#allocation3 + $0xf0] sm:$0xff]  ;;  %v6586_v63 = vpack.c.bf16 %v190_v58, %v189_v57  ;;  %v192_v2 = vld [vmem:[#allocation6 + $0x58] sm:$0xff] }
  0x46   :  { %v191_v1 = vld [vmem:[#allocation6 + $0x50] sm:$0xff]  ;;  %v6568_v3 = vpack.c.bf16 %v102_v62, %v100_v61  ;;  %v67_v4 = vld [vmem:[%s7968_s1] sm:$0xff]  ;;  %v194_v7 = vld [vmem:[#allocation6 + $0x68] sm:$0xff] }
  0x47   :  { %6553 = vmatpush1.bf16.msra.mxu0 %v6552_v28  ;;  %6577 = vmatpush3.bf16.msra.mxu1 %v6574_v38  ;;  %v6590_v5 = vpack.c.bf16 %v192_v2, %v191_v1  ;;  %v193_v6 = vld [vmem:[#allocation6 + $0x60] sm:$0xff]  ;;  %v69_v8 = vadd.f32 %v67_v4, %v6991_v26  ;;  %v66_v9 = vld [vmem:[%s7967_s0 + $0x8] sm:$0xff]  ;;  %v195_v12 = vld [vmem:[#allocation6 + $0x70] sm:$0xff] }
  0x48   :  { %6555 = vmatprep.subr.bf16.mxu0 %v6554_v32  ;;  %6579 = vmatprep.subr.bf16.mxu1 %v6578_v46  ;;  %v68_v10 = vld [vmem:[%s7968_s1 + $0x8] sm:$0xff]  ;;  %v6594_v11 = vpack.c.bf16 %v194_v7, %v193_v6  ;;  %v196_v13 = vld [vmem:[#allocation6 + $0x78] sm:$0xff]  ;;  %v7018_v19 = vld [vmem:[%s7972_s5] sm:$0xff] }
  0x49   :  { %v70_v14 = vadd.f32 %v68_v10, %v66_v9  ;;  %v6598_v15 = vpack.c.bf16 %v196_v13, %v195_v12  ;;  %v279_v21 = vrot.slane %v7018_v19, %v278_v18  ;;  %v285_v22 = vrot.slane %v7018_v19, %v284_v20 }
  0x4a   :  { %v200_v34 = vrot.slane %v7018_v19, %v199_v33 }
  0x4b   :  { %6557 = vmatpush1.bf16.msra.mxu0 %v6556_v41  ;;  %6581 = vmatpush3.bf16.msra.mxu1 %v6578_v46 }
  0x4c   :  { %6559 = vmatprep.subr.bf16.mxu0 %v6558_v42  ;;  %6583 = vmatprep.subr.bf16.mxu1 %v6582_v55 }
  0x4f   :  { %6561 = vmatpush1.bf16.msra.mxu0 %v6560_v50  ;;  %6585 = vmatpush3.bf16.msra.mxu1 %v6582_v55 }
  0x50   :  { %6563 = vmatprep.subr.bf16.mxu0 %v6562_v51  ;;  %6587 = vmatprep.subr.bf16.mxu1 %v6586_v63 }
  0x53   :  { %6565 = vmatpush1.bf16.msra.mxu0 %v6564_v59  ;;  %6589 = vmatpush3.bf16.msra.mxu1 %v6586_v63 }
  0x54   :  { %6567 = vmatprep.subr.bf16.mxu0 %v6566_v60  ;;  %6591 = vmatprep.subr.bf16.mxu1 %v6590_v5 }
  0x57   :  { %6569 = vmatpush1.bf16.msra.mxu0 %v6568_v3  ;;  %6593 = vmatpush3.bf16.msra.mxu1 %v6590_v5 }
  0x58   :  { %6183 = vmatprep.subr.mxu0 %v7975_v0  ;;  %6595 = vmatprep.subr.bf16.mxu1 %v6594_v11 }
  0x5a   :  { %169 = vmatmul.mubr.f32.vlgmr.msra.gmra.mrb[0].mxu0 %v69_v8 }
  0x5b   :  { %174 = vmatprep.mubr.f32.mxu0 %v7975_v0  ;;  %6597 = vmatpush3.bf16.msra.mxu1 %v6594_v11 }
  0x5c   :  { %6599 = vmatprep.subr.bf16.mxu1 %v6598_v15 }
  0x5e   :  { %175 = vmatmul.mubr.f32.gmra.mrb[2].mxu0 %v70_v14 }
  0x5f   :  { %6601 = vmatpush3.bf16.msra.mxu1 %v6598_v15  ;;  %6185 = vmatprep.mubr.msk.f32.mxu0 %vm6894_vm0, %v7975_v0 }
  0x60   :  { %6213 = vmatprep.subr.mxu1 %v7975_v0 }
  0x62   :  { %6181 = vmatmul.mubr.f32.vlgmr.msra.gmra.mrb[0].mxu1 %v66_v9 }
  0x63   :  { %6215 = vmatprep.mubr.msk.f32.mxu1 %vm6894_vm0, %v7975_v0 }
 0x12d   :  { %v170_v23 = vpop.f32.mrb[0].mxu0 }
 0x12e   :  { %v280_v24 = vadd.f32 %v279_v21, %v170_v23  ;;  %v172_v25 = vpop.f32.mrb[1].mxu0 }
 0x12f   :  { %v286_v26 = vadd.f32 %v285_v22, %v172_v25 }
 0x130   :  { %294 = vrot.lane.b32.xlu1 %v280_v24, %s6895_s3  ;;  %290 = vrot.lane.b32.xlu0 %v280_v24, %s6896_s22 }
 0x131   :  { %6184 = vmatpush3.xpose.msk.msra.mxu0 %vm504_vm1, %v286_v26  ;;  %v176_v27 = vpop.f32.mrb[2].mxu0 }
 0x132   :  { %v178_v28 = vpop.f32.mrb[3].mxu0  ;;  %6188 = vmatprep.subr.mxu0 %v7975_v0  ;;  %v7064_v32 = vadd.f32 %v279_v21, %v176_v27 }
 0x133   :  { %v7027_v29 = vadd.f32 %v285_v22, %v178_v28 }
 0x134   :  { %298 = vrot.lane.b32.xlu1 %v280_v24, %s6897_s23  ;;  %310 = vrot.lane.b32.xlu0 %v280_v24, %s6898_s24 }
 0x135   :  { %6186 = vmatmul.mubr.msk.f32.vlgmr.msra.gmra.mrb[4].mxu0 %vm504_vm1, %v280_v24  ;;  %v7036_v30 = vpop.f32.mrb[0].mxu1 }
 0x136   :  { %6190 = vmatprep.mubr.msk.f32.mxu0 %vm6894_vm0, %v7975_v0  ;;  %v7038_v31 = vpop.f32.mrb[1].mxu1  ;;  %v7167_v50 = vadd.f32 %v7036_v30, %v200_v34 }
 0x137   :  { %v7129_v37 = vadd.f32 %v7038_v31, %v200_v34 }
 0x138   :  { %302 = vrot.lane.b32.xlu1 %v280_v24, %s6899_s25  ;;  %318 = vrot.lane.b32.xlu0 %v280_v24, %s6900_s26 }
 0x13c   :  { %306 = vrot.lane.b32.xlu1 %v280_v24, %s6901_s27  ;;  %326 = vrot.lane.b32.xlu0 %v280_v24, %s6902_s28 }
 0x140   :  { %314 = vrot.lane.b32.xlu1 %v280_v24, %s6903_s29  ;;  %334 = vrot.lane.b32.xlu0 %v280_v24, %s6904_s30 }
 0x144   :  { %322 = vrot.lane.b32.xlu1 %v280_v24, %s6905_s9  ;;  %342 = vrot.lane.b32.xlu0 %v280_v24, %s6891_s21 }
 0x148   :  { %330 = vrot.lane.b32.xlu1 %v280_v24, %s6906_s10  ;;  %352 = vrot.lane.b32.xlu0 %v286_v26, %s6896_s22 }
 0x14c   :  { %338 = vrot.lane.b32.xlu1 %v280_v24, %s6907_s11  ;;  %360 = vrot.lane.b32.xlu0 %v286_v26, %s6897_s23 }
 0x150   :  { %346 = vrot.lane.b32.xlu1 %v280_v24, %s6888_s8  ;;  %364 = vrot.lane.b32.xlu0 %v286_v26, %s6899_s25 }
 0x154   :  { %356 = vrot.lane.b32.xlu1 %v286_v26, %s6895_s3  ;;  %368 = vrot.lane.b32.xlu0 %v286_v26, %s6901_s27 }
 0x158   :  { %376 = vrot.lane.b32.xlu1 %v286_v26, %s6903_s29  ;;  %372 = vrot.lane.b32.xlu0 %v286_v26, %s6898_s24 }
 0x15c   :  { %384 = vrot.lane.b32.xlu1 %v286_v26, %s6905_s9  ;;  %380 = vrot.lane.b32.xlu0 %v286_v26, %s6900_s26 }
 0x160   :  { %392 = vrot.lane.b32.xlu1 %v286_v26, %s6906_s10  ;;  %388 = vrot.lane.b32.xlu0 %v286_v26, %s6902_s28 }
 0x164   :  { %400 = vrot.lane.b32.xlu1 %v286_v26, %s6907_s11  ;;  %396 = vrot.lane.b32.xlu0 %v286_v26, %s6904_s30 }
 0x168   :  { %408 = vrot.lane.b32.xlu1 %v286_v26, %s6888_s8  ;;  %404 = vrot.lane.b32.xlu0 %v286_v26, %s6891_s21 }
 0x16c   :  { %296 = vrot.lane.b32.xlu0 %v7064_v32, %s6895_s3  ;;  %292 = vrot.lane.b32.xlu1 %v7064_v32, %s6896_s22 }
 0x170   :  { %304 = vrot.lane.b32.xlu0 %v7064_v32, %s6899_s25  ;;  %300 = vrot.lane.b32.xlu1 %v7064_v32, %s6897_s23 }
 0x174   :  { %312 = vrot.lane.b32.xlu0 %v7064_v32, %s6898_s24  ;;  %308 = vrot.lane.b32.xlu1 %v7064_v32, %s6901_s27 }
 0x178   :  { %320 = vrot.lane.b32.xlu0 %v7064_v32, %s6900_s26  ;;  %316 = vrot.lane.b32.xlu1 %v7064_v32, %s6903_s29 }
 0x17c   :  { %328 = vrot.lane.b32.xlu0 %v7064_v32, %s6902_s28  ;;  %324 = vrot.lane.b32.xlu1 %v7064_v32, %s6905_s9 }
 0x180   :  { %336 = vrot.lane.b32.xlu0 %v7064_v32, %s6904_s30  ;;  %332 = vrot.lane.b32.xlu1 %v7064_v32, %s6906_s10 }
 0x184   :  { %340 = vrot.lane.b32.xlu1 %v7064_v32, %s6907_s11  ;;  %354 = vrot.lane.b32.xlu0 %v7027_v29, %s6896_s22 }
 0x188   :  { %362 = vrot.lane.b32.xlu1 %v7027_v29, %s6897_s23  ;;  %358 = vrot.lane.b32.xlu0 %v7027_v29, %s6895_s3 }
 0x18c   :  { %370 = vrot.lane.b32.xlu1 %v7027_v29, %s6901_s27  ;;  %366 = vrot.lane.b32.xlu0 %v7027_v29, %s6899_s25 }
 0x190   :  { %378 = vrot.lane.b32.xlu1 %v7027_v29, %s6903_s29  ;;  %374 = vrot.lane.b32.xlu0 %v7027_v29, %s6898_s24 }
 0x194   :  { %386 = vrot.lane.b32.xlu1 %v7027_v29, %s6905_s9  ;;  %382 = vrot.lane.b32.xlu0 %v7027_v29, %s6900_s26 }
 0x198   :  { %394 = vrot.lane.b32.xlu1 %v7027_v29, %s6906_s10  ;;  %390 = vrot.lane.b32.xlu0 %v7027_v29, %s6902_s28 }
 0x19c   :  { %402 = vrot.lane.b32.xlu1 %v7027_v29, %s6907_s11  ;;  %398 = vrot.lane.b32.xlu0 %v7027_v29, %s6904_s30 }
 0x1a0   :  { %410 = vrot.lane.b32.xlu1 %v7027_v29, %s6888_s8  ;;  %406 = vrot.lane.b32.xlu0 %v7027_v29, %s6891_s21 }
 0x1a2   :  { %v295_v35 = vpop.permute.xlu1 %294  ;;  %v291_v36 = vpop.permute.xlu0 %290 }
 0x1a4   :  { %348 = vrot.lane.b32.xlu1 %v7064_v32, %s6888_s8  ;;  %344 = vrot.lane.b32.xlu0 %v7064_v32, %s6891_s21 }
 0x1a6   :  { %v299_v38 = vpop.permute.xlu1 %298  ;;  %v311_v39 = vpop.permute.xlu0 %310 }
 0x1a8   :  { %414 = vrot.lane.b32.xlu0 %v7129_v37, %s6896_s22  ;;  %420 = vrot.lane.b32.xlu1 %v7129_v37, %s6895_s3 }
 0x1aa   :  { %v303_v40 = vpop.permute.xlu1 %302  ;;  %v319_v41 = vpop.permute.xlu0 %318 }
 0x1ac   :  { %432 = vrot.lane.b32.xlu0 %v7129_v37, %s6899_s25  ;;  %426 = vrot.lane.b32.xlu1 %v7129_v37, %s6897_s23 }
 0x1ae   :  { %v7139_v42 = vpop.permute.xlu1 %306  ;;  %v7141_v43 = vpop.permute.xlu0 %326 }
 0x1b0   :  { %450 = vrot.lane.b32.xlu0 %v7129_v37, %s6903_s29  ;;  %438 = vrot.lane.b32.xlu1 %v7129_v37, %s6901_s27 }
 0x1b2   :  { %v7147_v44 = vpop.permute.xlu1 %314  ;;  %v7149_v45 = vpop.permute.xlu0 %334 }
 0x1b4   :  { %468 = vrot.lane.b32.xlu0 %v7129_v37, %s6902_s28  ;;  %444 = vrot.lane.b32.xlu1 %v7129_v37, %s6898_s24 }
 0x1b6   :  { %v7155_v46 = vpop.permute.xlu1 %322  ;;  %v7157_v47 = vpop.permute.xlu0 %342 }
 0x1b8   :  { %480 = vrot.lane.b32.xlu0 %v7129_v37, %s6904_s30  ;;  %456 = vrot.lane.b32.xlu1 %v7129_v37, %s6900_s26 }
 0x1ba   :  { %v7163_v48 = vpop.permute.xlu1 %330  ;;  %v353_v49 = vpop.permute.xlu0 %352 }
 0x1bb   :  { %6189 = vmatpush3.xpose.msk.msra.mxu0 %vm504_vm1, %v353_v49 }
 0x1bc   :  { %6193 = vmatprep.subr.mxu0 %v7975_v0  ;;  %492 = vrot.lane.b32.xlu0 %v7129_v37, %s6891_s21 }
 0x1bd   :  { %462 = vrot.lane.b32.xlu1 %v7129_v37, %s6905_s9 }
 0x1be   :  { %v7174_v51 = vpop.permute.xlu1 %338  ;;  %v361_v52 = vpop.permute.xlu0 %360  ;;  %6191 = vmatmul.mubr.msk.f32.vlgmr.msra.gmra.mrb[6].mxu0 %vm504_vm1, %v291_v36 }
 0x1bf   :  { %6195 = vmatprep.mubr.msk.f32.mxu0 %vm6894_vm0, %v7975_v0 }
 0x1c0   :  { %416 = vrot.lane.b32.xlu0 %v7167_v50, %s6896_s22 }
 0x1c1   :  { %474 = vrot.lane.b32.xlu1 %v7129_v37, %s6906_s10 }
 0x1c2   :  { %v7183_v53 = vpop.permute.xlu1 %346  ;;  %v365_v54 = vpop.permute.xlu0 %364 }
 0x1c4   :  { %422 = vrot.lane.b32.xlu0 %v7167_v50, %s6895_s3 }
 0x1c5   :  { %486 = vrot.lane.b32.xlu1 %v7129_v37, %s6907_s11 }
 0x1c6   :  { %v357_v55 = vpop.permute.xlu1 %356  ;;  %v369_v56 = vpop.permute.xlu0 %368 }
 0x1c7   :  { %6194 = vmatpush3.xpose.msk.msra.mxu0 %vm504_vm1, %v357_v55 }
 0x1c8   :  { %6198 = vmatprep.subr.mxu0 %v7975_v0  ;;  %434 = vrot.lane.b32.xlu0 %v7167_v50, %s6899_s25 }
 0x1c9   :  { %498 = vrot.lane.b32.xlu1 %v7129_v37, %s6888_s8 }
 0x1ca   :  { %v377_v57 = vpop.permute.xlu1 %376  ;;  %v373_v58 = vpop.permute.xlu0 %372  ;;  %6196 = vmatmul.mubr.msk.f32.vlgmr.msra.gmra.mrb[8].mxu0 %vm504_vm1, %v295_v35 }
 0x1cb   :  { %6199 = vmatpush3.xpose.msk.msra.mxu0 %vm504_vm1, %v361_v52  ;;  %6214 = vmatpush3.xpose.msk.msra.mxu1 %vm504_vm1, %v373_v58 }
 0x1cc   :  { %6200 = vmatprep.mubr.msk.f32.mxu0 %vm6894_vm0, %v7975_v0  ;;  %6223 = vmatprep.subr.mxu1 %v7975_v0 }
 0x1cd   :  { %6203 = vmatprep.subr.mxu0 %v7975_v0  ;;  %440 = vrot.lane.b32.xlu0 %v7167_v50, %s6901_s27 }
 0x1ce   :  { %v385_v59 = vpop.permute.xlu1 %384  ;;  %6216 = vmatmul.mubr.msk.f32.vlgmr.msra.gmra.mrb[2].mxu1 %vm504_vm1, %v311_v39  ;;  %v381_v60 = vpop.permute.xlu0 %380  ;;  %6201 = vmatmul.mubr.msk.f32.vlgmr.msra.gmra.mrb[10].mxu0 %vm504_vm1, %v299_v38 }
 0x1cf   :  { %6204 = vmatpush3.xpose.msk.msra.mxu0 %vm504_vm1, %v365_v54  ;;  %6224 = vmatpush3.xpose.msk.msra.mxu1 %vm504_vm1, %v381_v60 }
 0x1d0   :  { %6205 = vmatprep.mubr.msk.f32.mxu0 %vm6894_vm0, %v7975_v0  ;;  %6225 = vmatprep.mubr.msk.f32.mxu1 %vm6894_vm0, %v7975_v0 }
 0x1d1   :  { %6233 = vmatprep.subr.mxu1 %v7975_v0  ;;  %6208 = vmatprep.subr.mxu0 %v7975_v0 }
 0x1d2   :  { %v393_v61 = vpop.permute.xlu1 %392  ;;  %6226 = vmatmul.mubr.msk.f32.vlgmr.msra.gmra.mrb[4].mxu1 %vm504_vm1, %v319_v41  ;;  %v389_v62 = vpop.permute.xlu0 %388  ;;  %6206 = vmatmul.mubr.msk.f32.vlgmr.msra.gmra.mrb[12].mxu0 %vm504_vm1, %v303_v40 }
 0x1d3   :  { %6209 = vmatpush3.xpose.msk.msra.mxu0 %vm504_vm1, %v369_v56  ;;  %6234 = vmatpush3.xpose.msk.msra.mxu1 %vm504_vm1, %v389_v62 }
 0x1d4   :  { %6210 = vmatprep.mubr.msk.f32.mxu0 %vm6894_vm0, %v7975_v0  ;;  %6235 = vmatprep.mubr.msk.f32.mxu1 %vm6894_vm0, %v7975_v0 }
 0x1d5   :  { %6243 = vmatprep.subr.mxu1 %v7975_v0  ;;  %6218 = vmatprep.subr.mxu0 %v7975_v0 }
 0x1d6   :  { %v401_v63 = vpop.permute.xlu1 %400  ;;  %6236 = vmatmul.mubr.msk.f32.vlgmr.msra.gmra.mrb[6].mxu1 %vm504_vm1, %v7141_v43  ;;  %v397_v1 = vpop.permute.xlu0 %396  ;;  %6211 = vmatmul.mubr.msk.f32.vlgmr.msra.gmra.mrb[14].mxu0 %vm504_vm1, %v7139_v42 }
 0x1d7   :  { %6219 = vmatpush3.xpose.msk.msra.mxu0 %vm504_vm1, %v377_v57  ;;  %6244 = vmatpush3.xpose.msk.msra.mxu1 %vm504_vm1, %v397_v1 }
 0x1d8   :  { %6220 = vmatprep.mubr.msk.f32.mxu0 %vm6894_vm0, %v7975_v0  ;;  %6245 = vmatprep.mubr.msk.f32.mxu1 %vm6894_vm0, %v7975_v0 }
 0x1d9   :  { %6253 = vmatprep.subr.mxu1 %v7975_v0  ;;  %6228 = vmatprep.subr.mxu0 %v7975_v0 }
 0x1da   :  { %v409_v2 = vpop.permute.xlu1 %408  ;;  %6246 = vmatmul.mubr.msk.f32.vlgmr.msra.gmra.mrb[8].mxu1 %vm504_vm1, %v7149_v45  ;;  %v405_v3 = vpop.permute.xlu0 %404  ;;  %6221 = vmatmul.mubr.msk.f32.vlgmr.msra.gmra.mrb[16].mxu0 %vm504_vm1, %v7147_v44 }
 0x1db   :  { %6229 = vmatpush3.xpose.msk.msra.mxu0 %vm504_vm1, %v385_v59  ;;  %6254 = vmatpush3.xpose.msk.msra.mxu1 %vm504_vm1, %v405_v3 }
 0x1dc   :  { %6230 = vmatprep.mubr.msk.f32.mxu0 %vm6894_vm0, %v7975_v0  ;;  %6255 = vmatprep.mubr.msk.f32.mxu1 %vm6894_vm0, %v7975_v0 }
 0x1dd   :  { %6238 = vmatprep.subr.mxu0 %v7975_v0  ;;  %6263 = vmatprep.subr.mxu1 %v7975_v0 }
 0x1de   :  { %6231 = vmatmul.mubr.msk.f32.vlgmr.msra.gmra.mrb[18].mxu0 %vm504_vm1, %v7155_v46  ;;  %6256 = vmatmul.mubr.msk.f32.vlgmr.msra.gmra.mrb[10].mxu1 %vm504_vm1, %v7157_v47  ;;  %v297_v4 = vpop.permute.xlu0 %296  ;;  %v293_v5 = vpop.permute.xlu1 %292 }
 0x1df   :  { %446 = vrot.lane.b32.xlu0 %v7167_v50, %s6898_s24  ;;  %6239 = vmatpush3.xpose.msk.msra.mxu0 %vm504_vm1, %v393_v61 }
 0x1e0   :  { %6264 = vmatpush3.xpose.msk.msra.mxu1 %vm504_vm1, %v7027_v29  ;;  %6240 = vmatprep.mubr.msk.f32.mxu0 %vm6894_vm0, %v7975_v0 }
 0x1e1   :  { %6265 = vmatprep.mubr.msk.f32.mxu1 %vm6894_vm0, %v7975_v0  ;;  %6248 = vmatprep.subr.mxu0 %v7975_v0 }
 0x1e2   :  { %6241 = vmatmul.mubr.msk.f32.vlgmr.msra.gmra.mrb[20].mxu0 %vm504_vm1, %v7163_v48  ;;  %v305_v6 = vpop.permute.xlu0 %304  ;;  %v301_v7 = vpop.permute.xlu1 %300  ;;  %6273 = vmatprep.subr.mxu1 %v7975_v0 }
 0x1e3   :  { %452 = vrot.lane.b32.xlu0 %v7167_v50, %s6903_s29  ;;  %6266 = vmatmul.mubr.msk.f32.vlgmr.msra.gmra.mrb[12].mxu1 %vm504_vm1, %v7064_v32 }
 0x1e4   :  { %6249 = vmatpush3.xpose.msk.msra.mxu0 %vm504_vm1, %v401_v63  ;;  %6250 = vmatprep.mubr.msk.f32.mxu0 %vm6894_vm0, %v7975_v0 }
 0x1e5   :  { %6258 = vmatprep.subr.mxu0 %v7975_v0  ;;  %6275 = vmatprep.mubr.msk.f32.mxu1 %vm6894_vm0, %v7975_v0 }
 0x1e6   :  { %v313_v8 = vpop.permute.xlu0 %312  ;;  %v309_v9 = vpop.permute.xlu1 %308  ;;  %428 = vrot.lane.b32.xlu1 %v7167_v50, %s6897_s23 }
 0x1e7   :  { %6251 = vmatmul.mubr.msk.f32.vlgmr.msra.gmra.mrb[22].mxu0 %vm504_vm1, %v7174_v51  ;;  %458 = vrot.lane.b32.xlu0 %v7167_v50, %s6900_s26 }
 0x1e8   :  { %6259 = vmatpush3.xpose.msk.msra.mxu0 %vm504_vm1, %v409_v2  ;;  %6260 = vmatprep.mubr.msk.f32.mxu0 %vm6894_vm0, %v7975_v0 }
 0x1e9   :  { %6268 = vmatprep.subr.mxu0 %v7975_v0 }
 0x1ea   :  { %v321_v10 = vpop.permute.xlu0 %320  ;;  %v317_v11 = vpop.permute.xlu1 %316  ;;  %464 = vrot.lane.b32.xlu1 %v7167_v50, %s6905_s9 }
 0x1eb   :  { %6261 = vmatmul.mubr.msk.f32.vlgmr.msra.gmra.mrb[24].mxu0 %vm504_vm1, %v7183_v53  ;;  %470 = vrot.lane.b32.xlu0 %v7167_v50, %s6902_s28 }
 0x1ec   :  { %6270 = vmatprep.mubr.msk.f32.mxu0 %vm6894_vm0, %v7975_v0 }
 0x1ee   :  { %v7293_v12 = vpop.permute.xlu0 %328  ;;  %v325_v13 = vpop.permute.xlu1 %324  ;;  %476 = vrot.lane.b32.xlu1 %v7167_v50, %s6906_s10 }
 0x1f2   :  { %v7297_v14 = vpop.permute.xlu0 %336  ;;  %v333_v15 = vpop.permute.xlu1 %332 }
 0x1f6   :  { %v7299_v18 = vpop.permute.xlu1 %340  ;;  %v355_v19 = vpop.permute.xlu0 %354 }
 0x1f7   :  { %6269 = vmatpush3.xpose.msk.msra.mxu0 %vm504_vm1, %v355_v19 }
 0x1f8   :  { %6278 = vmatprep.subr.mxu0 %v7975_v0 }
 0x1fa   :  { %v363_v20 = vpop.permute.xlu1 %362  ;;  %6271 = vmatmul.mubr.msk.f32.vlgmr.msra.gmra.mrb[26].mxu0 %vm504_vm1, %v293_v5  ;;  %v359_v21 = vpop.permute.xlu0 %358 }
 0x1fb   :  { %6274 = vmatpush3.xpose.msk.msra.mxu1 %vm504_vm1, %v359_v21  ;;  %6279 = vmatpush3.xpose.msk.msra.mxu0 %vm504_vm1, %v363_v20 }
 0x1fc   :  { %6280 = vmatprep.mubr.msk.f32.mxu0 %vm6894_vm0, %v7975_v0  ;;  %6288 = vmatprep.subr.mxu0 %v7975_v0 }
 0x1fd   :  { %6283 = vmatprep.subr.mxu1 %v7975_v0 }
 0x1fe   :  { %v371_v22 = vpop.permute.xlu1 %370  ;;  %6281 = vmatmul.mubr.msk.f32.vlgmr.msra.gmra.mrb[28].mxu0 %vm504_vm1, %v301_v7  ;;  %v367_v23 = vpop.permute.xlu0 %366  ;;  %6276 = vmatmul.mubr.msk.f32.vlgmr.msra.gmra.mrb[14].mxu1 %vm504_vm1, %v297_v4 }
 0x1ff   :  { %6284 = vmatpush3.xpose.msk.msra.mxu1 %vm504_vm1, %v367_v23  ;;  %6289 = vmatpush3.xpose.msk.msra.mxu0 %vm504_vm1, %v371_v22 }
 0x200   :  { %6285 = vmatprep.mubr.msk.f32.mxu1 %vm6894_vm0, %v7975_v0  ;;  %6290 = vmatprep.mubr.msk.f32.mxu0 %vm6894_vm0, %v7975_v0 }
 0x201   :  { %6298 = vmatprep.subr.mxu0 %v7975_v0  ;;  %6293 = vmatprep.subr.mxu1 %v7975_v0 }
 0x202   :  { %v379_v24 = vpop.permute.xlu1 %378  ;;  %6291 = vmatmul.mubr.msk.f32.vlgmr.msra.gmra.mrb[30].mxu0 %vm504_vm1, %v309_v9  ;;  %v375_v25 = vpop.permute.xlu0 %374  ;;  %6286 = vmatmul.mubr.msk.f32.vlgmr.msra.gmra.mrb[16].mxu1 %vm504_vm1, %v305_v6 }
 0x203   :  { %6294 = vmatpush3.xpose.msk.msra.mxu1 %vm504_vm1, %v375_v25  ;;  %6299 = vmatpush3.xpose.msk.msra.mxu0 %vm504_vm1, %v379_v24 }
 0x204   :  { %6295 = vmatprep.mubr.msk.f32.mxu1 %vm6894_vm0, %v7975_v0  ;;  %6300 = vmatprep.mubr.msk.f32.mxu0 %vm6894_vm0, %v7975_v0 }
 0x205   :  { %6308 = vmatprep.subr.mxu0 %v7975_v0  ;;  %6303 = vmatprep.subr.mxu1 %v7975_v0 }
 0x206   :  { %v387_v26 = vpop.permute.xlu1 %386  ;;  %6301 = vmatmul.mubr.msk.f32.vlgmr.msra.gmra.mrb[32].mxu0 %vm504_vm1, %v317_v11  ;;  %v383_v27 = vpop.permute.xlu0 %382  ;;  %6296 = vmatmul.mubr.msk.f32.vlgmr.msra.gmra.mrb[18].mxu1 %vm504_vm1, %v313_v8 }
 0x207   :  { %6304 = vmatpush3.xpose.msk.msra.mxu1 %vm504_vm1, %v383_v27  ;;  %6309 = vmatpush3.xpose.msk.msra.mxu0 %vm504_vm1, %v387_v26 }
 0x208   :  { %v7334_v28 = vpop.f32.mrb[4].mxu0  ;;  %6305 = vmatprep.mubr.msk.f32.mxu1 %vm6894_vm0, %v7975_v0  ;;  %6310 = vmatprep.mubr.msk.f32.mxu0 %vm6894_vm0, %v7975_v0 }
 0x209   :  { %v6187_v29 = vpop.f32.mrb[5].mxu0  ;;  %v2873_v30 = vsel %vm504_vm1, %v7334_v28, -inf  ;;  %6318 = vmatprep.subr.mxu0 %v7975_v0  ;;  %6313 = vmatprep.subr.mxu1 %v7975_v0 }
 0x20a   :  { %2874 = vmax.xlane.f32.xlu0 %v2873_v30  ;;  %v395_v31 = vpop.permute.xlu1 %394  ;;  %6311 = vmatmul.mubr.msk.f32.vlgmr.msra.gmra.mrb[34].mxu0 %vm504_vm1, %v325_v13  ;;  %v391_v32 = vpop.permute.xlu0 %390 }
 0x20b   :  { %6306 = vmatmul.mubr.msk.f32.vlgmr.msra.gmra.mrb[20].mxu1 %vm504_vm1, %v321_v10  ;;  %6319 = vmatpush3.xpose.msk.msra.mxu0 %vm504_vm1, %v395_v31 }
 0x20c   :  { %6314 = vmatpush3.xpose.msk.msra.mxu1 %vm504_vm1, %v391_v32  ;;  %6315 = vmatprep.mubr.msk.f32.mxu1 %vm6894_vm0, %v7975_v0 }
 0x20d   :  { %6320 = vmatprep.mubr.msk.f32.mxu0 %vm6894_vm0, %v7975_v0  ;;  %6328 = vmatprep.subr.mxu0 %v7975_v0 }
 0x20e   :  { %v403_v33 = vpop.permute.xlu1 %402  ;;  %6321 = vmatmul.mubr.msk.f32.vlgmr.msra.gmra.mrb[36].mxu0 %vm504_vm1, %v333_v15  ;;  %v399_v34 = vpop.permute.xlu0 %398  ;;  %6323 = vmatprep.subr.mxu1 %v7975_v0 }
 0x20f   :  { %6316 = vmatmul.mubr.msk.f32.vlgmr.msra.gmra.mrb[22].mxu1 %vm504_vm1, %v7293_v12  ;;  %6329 = vmatpush3.xpose.msk.msra.mxu0 %vm504_vm1, %v403_v33 }
 0x210   :  { %6324 = vmatpush3.xpose.msk.msra.mxu1 %vm504_vm1, %v399_v34  ;;  %6325 = vmatprep.mubr.msk.f32.mxu1 %vm6894_vm0, %v7975_v0 }
 0x211   :  { %6330 = vmatprep.mubr.msk.f32.mxu0 %vm6894_vm0, %v7975_v0  ;;  %6338 = vmatprep.subr.mxu0 %v7975_v0 }
 0x212   :  { %v411_v35 = vpop.permute.xlu1 %410  ;;  %6331 = vmatmul.mubr.msk.f32.vlgmr.msra.gmra.mrb[38].mxu0 %vm504_vm1, %v7299_v18  ;;  %v407_v36 = vpop.permute.xlu0 %406  ;;  %6333 = vmatprep.subr.mxu1 %v7975_v0 }
 0x213   :  { %6326 = vmatmul.mubr.msk.f32.vlgmr.msra.gmra.mrb[24].mxu1 %vm504_vm1, %v7297_v14  ;;  %6339 = vmatpush3.xpose.msk.msra.mxu0 %vm504_vm1, %v411_v35 }
 0x214   :  { %6334 = vmatpush3.xpose.msk.msra.mxu1 %vm504_vm1, %v407_v36  ;;  %6340 = vmatprep.mubr.msk.f32.mxu0 %vm6894_vm0, %v7975_v0 }
 0x215   :  { %6335 = vmatprep.mubr.msk.f32.mxu1 %vm6894_vm0, %v7975_v0  ;;  %6343 = vmatprep.subr.mxu1 %v7975_v0 }
 0x216   :  { %v349_v38 = vpop.permute.xlu1 %348  ;;  %v345_v39 = vpop.permute.xlu0 %344  ;;  %6348 = vmatprep.subr.mxu0 %v7975_v0 }
 0x217   :  { %6336 = vmatmul.mubr.msk.f32.vlgmr.msra.gmra.mrb[26].mxu1 %vm504_vm1, %v345_v39  ;;  %6341 = vmatmul.mubr.msk.f32.vlgmr.msra.gmra.mrb[40].mxu0 %vm504_vm1, %v349_v38 }
 0x218   :  { %6344 = vmatpush3.msra.mxu1 %v7129_v37  ;;  %6345 = vmatprep.mubr.msk.f32.mxu1 %vm6894_vm0, %v7975_v0 }
 0x219   :  { %6353 = vmatprep.subr.mxu1 %v7975_v0  ;;  %6350 = vmatprep.mubr.msk.f32.mxu0 %vm6894_vm0, %v7975_v0 }
 0x21a   :  { %v415_v40 = vpop.permute.xlu0 %414  ;;  %v421_v12 = vpop.permute.xlu1 %420 }
 0x21b   :  { %6349 = vmatpush3.msra.mxu0 %v415_v40 }
 0x21c   :  { %6358 = vmatprep.subr.mxu0 %v7975_v0 }
 0x21e   :  { %v7386_v41 = vpop.permute.xlu0 %432 }
 0x222   :  { %v7388_v42 = vpop.permute.xlu0 %450 }
 0x226   :  { %v7390_v43 = vpop.permute.xlu0 %468 }
 0x22a   :  { %v7392_v44 = vpop.permute.xlu0 %480 }
 0x22e   :  { %v7394_v37 = vpop.permute.xlu0 %492 }
 0x232   :  { %v7396_v45 = vpop.permute.xlu0 %416 }
 0x236   :  { %v7398_v46 = vpop.permute.xlu0 %422 }
 0x23a   :  { %v7400_v47 = vpop.permute.xlu0 %434 }
 0x23f   :  { %v7402_v48 = vpop.permute.xlu0 %440 }
 0x251   :  { %v7404_v49 = vpop.permute.xlu0 %446 }
 0x255   :  { %v7406_v51 = vpop.permute.xlu0 %452 }
 0x256   :  { %7982 = vst [vmem:[#allocation14_spill] sm:$0xff] %v7406_v51 }
 0x259   :  { %v7408_v52 = vpop.permute.xlu0 %458 }
 0x25d   :  { %v7412_v54 = vpop.permute.xlu0 %470 }
 0x291   :  { %v7410_v53 = vpop.f32.mrb[6].mxu0 }
 0x292   :  { %v6192_v55 = vpop.f32.mrb[7].mxu0  ;;  %v2876_v56 = vsel %vm504_vm1, %v7410_v53, -inf }
 0x293   :  { %2877 = vmax.xlane.f32.xlu1 %v2876_v56 }
 0x297   :  { %v2875_v57 = vpop.xlane.xlu0 %2874 }
 0x298   :  { %v2969_v58 = vsub.f32 %v7334_v28, %v2875_v57 }
 0x29a   :  { %v3001_v59 = vmul.f32 1.442695, %v2969_v58 }
 0x29c   :  { %6657 = vpow2.f32 %v3001_v59 }
 0x29d   :  { %v7417_v60 = vpop.f32.mrb[8].mxu0 }
 0x29e   :  { %v6197_v61 = vpop.f32.mrb[9].mxu0  ;;  %v2879_v62 = vsel %vm504_vm1, %v7417_v60, -inf }
 0x29f   :  { %2880 = vmax.xlane.f32.xlu0 %v2879_v62 }
 0x2a1   :  { %v7421_v63 = vpop.f32.mrb[10].mxu0  ;;  %v7423_v1 = vpop.f32.mrb[2].mxu1 }
 0x2a2   :  { %v6202_v2 = vpop.f32.mrb[11].mxu0  ;;  %v6217_v3 = vpop.f32.mrb[3].mxu1  ;;  %v2891_v4 = vsel %vm504_vm1, %v7423_v1, -inf  ;;  %v2882_v5 = vsel %vm504_vm1, %v7421_v63, -inf }
 0x2a3   :  { %2892 = vmax.xlane.f32.xlu1 %v2891_v4  ;;  %2883 = vmax.xlane.f32.xlu0 %v2882_v5 }
 0x2a5   :  { %v7429_v6 = vpop.f32.mrb[12].mxu0  ;;  %v7431_v7 = vpop.f32.mrb[4].mxu1 }
 0x2a6   :  { %v7433_v8 = vpop.eup %6657  ;;  %v6207_v9 = vpop.f32.mrb[13].mxu0  ;;  %v2897_v11 = vsel %vm504_vm1, %v7431_v7, -inf  ;;  %v2885_v25 = vsel %vm504_vm1, %v7429_v6, -inf }
 0x2a7   :  { %v6227_v10 = vpop.f32.mrb[5].mxu1  ;;  %6346 = vmatmul.mubr.msk.f32.vlgmr.msra.gmra.mrb[28].mxu1 %vm504_vm1, %v7433_v8  ;;  %2898 = vmax.xlane.f32.xlu1 %v2897_v11 }
 0x2a8   :  { %6354 = vmatpush3.msra.mxu1 %v421_v12  ;;  %6355 = vmatprep.mubr.msk.f32.mxu1 %vm6894_vm0, %v7975_v0 }
 0x2a9   :  { %v7441_v13 = vpop.f32.mrb[14].mxu0  ;;  %v7443_v14 = vpop.f32.mrb[6].mxu1  ;;  %6363 = vmatprep.subr.mxu1 %v7975_v0 }
 0x2aa   :  { %v6212_v15 = vpop.f32.mrb[15].mxu0  ;;  %v6237_v18 = vpop.f32.mrb[7].mxu1  ;;  %v2903_v19 = vsel %vm504_vm1, %v7443_v14, -inf  ;;  %v2888_v20 = vsel %vm504_vm1, %v7441_v13, -inf }
 0x2ab   :  { %2904 = vmax.xlane.f32.xlu1 %v2903_v19  ;;  %2889 = vmax.xlane.f32.xlu0 %v2888_v20 }
 0x2ad   :  { %v7450_v21 = vpop.f32.mrb[16].mxu0  ;;  %v7452_v22 = vpop.f32.mrb[8].mxu1 }
 0x2ae   :  { %v6222_v23 = vpop.f32.mrb[17].mxu0  ;;  %v6247_v24 = vpop.f32.mrb[9].mxu1  ;;  %v2894_v26 = vsel %vm504_vm1, %v7450_v21, -inf  ;;  %v2909_v31 = vsel %vm504_vm1, %v7452_v22, -inf }
 0x2af   :  { %2886 = vmax.xlane.f32.xlu1 %v2885_v25  ;;  %2895 = vmax.xlane.f32.xlu0 %v2894_v26 }
 0x2b1   :  { %v7458_v27 = vpop.f32.mrb[18].mxu0  ;;  %v7460_v28 = vpop.f32.mrb[10].mxu1 }
 0x2b2   :  { %v6232_v29 = vpop.f32.mrb[19].mxu0  ;;  %v6257_v30 = vpop.f32.mrb[11].mxu1  ;;  %v2915_v35 = vsel %vm504_vm1, %v7460_v28, -inf  ;;  %v2900_v55 = vsel %vm504_vm1, %v7458_v27, -inf }
 0x2b3   :  { %2910 = vmax.xlane.f32.xlu1 %v2909_v31 }
 0x2b5   :  { %v7464_v32 = vpop.f32.mrb[20].mxu0 }
 0x2b6   :  { %v7466_v33 = vpop.f32.mrb[12].mxu1  ;;  %v6242_v34 = vpop.f32.mrb[21].mxu0  ;;  %v2906_v58 = vsel %vm504_vm1, %v7464_v32, -inf }
 0x2b7   :  { %v6267_v36 = vpop.f32.mrb[13].mxu1  ;;  %2916 = vmax.xlane.f32.xlu1 %v2915_v35  ;;  %v2921_v38 = vsel %vm504_vm1, %v7466_v33, -inf  ;;  %v427_v35 = vpop.permute.xlu1 %426 }
 0x2b8   :  { %2922 = vmax.xlane.f32.xlu0 %v2921_v38 }
 0x2ba   :  { %v7472_v39 = vpop.f32.mrb[22].mxu0 }
 0x2bb   :  { %v6252_v40 = vpop.f32.mrb[23].mxu0  ;;  %v2912_v59 = vsel %vm504_vm1, %v7472_v39, -inf }
 0x2bc   :  { %2901 = vmax.xlane.f32.xlu0 %v2900_v55 }
 0x2be   :  { %v7476_v56 = vpop.f32.mrb[24].mxu0 }
 0x2bf   :  { %v6262_v57 = vpop.f32.mrb[25].mxu0  ;;  %v2918_v25 = vsel %vm504_vm1, %v7476_v56, -inf }
 0x2c0   :  { %2907 = vmax.xlane.f32.xlu0 %v2906_v58 }
 0x2c4   :  { %2913 = vmax.xlane.f32.xlu0 %v2912_v59 }
 0x2cd   :  { %v7482_v61 = vpop.f32.mrb[26].mxu0 }
 0x2ce   :  { %v6272_v62 = vpop.f32.mrb[27].mxu0  ;;  %v2924_v34 = vsel %vm504_vm1, %v7482_v61, -inf }
 0x2cf   :  { %v7518_v62 = vpop.permute.xlu1 %438 }
 0x2d1   :  { %v7484_v2 = vpop.f32.mrb[14].mxu1  ;;  %v7486_v3 = vpop.f32.mrb[28].mxu0 }
 0x2d2   :  { %v6277_v4 = vpop.f32.mrb[15].mxu1  ;;  %v6282_v5 = vpop.f32.mrb[29].mxu0  ;;  %v2927_v9 = vsel %vm504_vm1, %v7484_v2, -inf }
 0x2d3   :  { %2928 = vmax.xlane.f32.xlu1 %v2927_v9 }
 0x2d5   :  { %v7490_v10 = vpop.f32.mrb[16].mxu1  ;;  %v7492_v11 = vpop.f32.mrb[30].mxu0 }
 0x2d6   :  { %v6287_v12 = vpop.f32.mrb[17].mxu1  ;;  %v6292_v15 = vpop.f32.mrb[31].mxu0  ;;  %v2933_v18 = vsel %vm504_vm1, %v7490_v10, -inf }
 0x2d7   :  { %2934 = vmax.xlane.f32.xlu1 %v2933_v18  ;;  %v2930_v15 = vsel %vm504_vm1, %v7486_v3, -inf }
 0x2d9   :  { %v7496_v19 = vpop.f32.mrb[18].mxu1  ;;  %v7498_v20 = vpop.f32.mrb[32].mxu0 }
 0x2da   :  { %v6297_v23 = vpop.f32.mrb[19].mxu1  ;;  %v6302_v24 = vpop.f32.mrb[33].mxu0  ;;  %v2939_v26 = vsel %vm504_vm1, %v7496_v19, -inf }
 0x2db   :  { %2919 = vmax.xlane.f32.xlu1 %v2918_v25  ;;  %2940 = vmax.xlane.f32.xlu0 %v2939_v26  ;;  %v7530_v26 = vpop.permute.xlu1 %444 }
 0x2dd   :  { %v7504_v29 = vpop.f32.mrb[34].mxu0 }
 0x2de   :  { %v7506_v30 = vpop.f32.mrb[20].mxu1  ;;  %v6312_v31 = vpop.f32.mrb[35].mxu0 }
 0x2df   :  { %v6307_v36 = vpop.f32.mrb[21].mxu1  ;;  %2925 = vmax.xlane.f32.xlu1 %v2924_v34  ;;  %v2945_v38 = vsel %vm504_vm1, %v7506_v30, -inf  ;;  %v7534_v31 = vpop.permute.xlu1 %456 }
 0x2e0   :  { %2946 = vmax.xlane.f32.xlu0 %v2945_v38 }
 0x2e1   :  { %v7512_v40 = vpop.f32.mrb[36].mxu0 }
 0x2e2   :  { %v7514_v55 = vpop.f32.mrb[22].mxu1  ;;  %v6322_v57 = vpop.f32.mrb[37].mxu0  ;;  %v2954_v16 = vsel %vm504_vm1, %v7512_v40, -inf }
 0x2e3   :  { %v6317_v58 = vpop.f32.mrb[23].mxu1  ;;  %v2951_v59 = vsel %vm504_vm1, %v7514_v55, -inf  ;;  %v7536_v34 = vpop.permute.xlu1 %462 }
 0x2e4   :  { %2952 = vmax.xlane.f32.xlu0 %v2951_v59  ;;  %v2936_v59 = vsel %vm504_vm1, %v7492_v11, -inf }
 0x2e5   :  { %v7520_v4 = vpop.f32.mrb[38].mxu0 }
 0x2e6   :  { %v7522_v5 = vpop.f32.mrb[24].mxu1  ;;  %v6332_v9 = vpop.f32.mrb[39].mxu0 }
 0x2e7   :  { %v6327_v12 = vpop.f32.mrb[25].mxu1  ;;  %v7538_v36 = vpop.permute.xlu1 %474 }
 0x2e8   :  { %2931 = vmax.xlane.f32.xlu0 %v2930_v15  ;;  %v2942_v12 = vsel %vm504_vm1, %v7498_v20, -inf  ;;  %v2948_v15 = vsel %vm504_vm1, %v7504_v29, -inf }
 0x2ea   :  { %v7526_v18 = vpop.f32.mrb[26].mxu1  ;;  %v7528_v23 = vpop.f32.mrb[40].mxu0 }
 0x2eb   :  { %7983 = vst [vmem:[#allocation15_spill] sm:$0xff] %v7526_v18  ;;  %7984 = vst [vmem:[#allocation16_spill] sm:$0xff] %v7528_v23  ;;  %v6337_v24 = vpop.f32.mrb[27].mxu1  ;;  %v6342_v25 = vpop.f32.mrb[41].mxu0  ;;  %v2963_v0 = vsel %vm504_vm1, %v7526_v18, -inf }
 0x2ec   :  { %v7542_v38 = vpop.permute.xlu1 %486  ;;  %v2957_v25 = vsel %vm504_vm1, %v7522_v5, -inf }
 0x2f0   :  { %488 = vrot.lane.b32.xlu1 %v7167_v50, %s6907_s11  ;;  %v7544_v57 = vpop.permute.xlu1 %498 }
 0x2f4   :  { %v7546_v58 = vpop.permute.xlu1 %428 }
 0x2f8   :  { %v7550_v9 = vpop.permute.xlu1 %464 }
 0x2f9   :  { %7985 = vst [vmem:[#allocation17_spill] sm:$0xff] %v7550_v9 }
 0x2fc   :  { %v7556_v24 = vpop.permute.xlu1 %476 }
 0x2fd   :  { %7986 = vst [vmem:[#allocation18_spill] sm:$0xff] %v7556_v24  ;;  %v2960_v24 = vsel %vm504_vm1, %v7520_v4, -inf }
 0x2fe   :  { %482 = vrot.lane.b32.xlu0 %v7167_v50, %s6904_s30 }
 0x314   :  { %2937 = vmax.xlane.f32.xlu1 %v2936_v59 }
 0x318   :  { %2943 = vmax.xlane.f32.xlu1 %v2942_v12 }
 0x31c   :  { %2949 = vmax.xlane.f32.xlu1 %v2948_v15  ;;  %v2966_v15 = vsel %vm504_vm1, %v7528_v23, -inf }
 0x31d   :  { %2958 = vmax.xlane.f32.xlu0 %v2957_v25 }
 0x320   :  { %v2878_v59 = vpop.xlane.xlu1 %2877  ;;  %2955 = vmax.xlane.f32.xlu1 %v2954_v16 }
 0x321   :  { %v2970_v12 = vsub.f32 %v7410_v53, %v2878_v59  ;;  %2964 = vmax.xlane.f32.xlu0 %v2963_v0 }
 0x323   :  { %v3003_v17 = vmul.f32 1.442695, %v2970_v12 }
 0x324   :  { %2961 = vmax.xlane.f32.xlu1 %v2960_v24 }
 0x325   :  { %6659 = vpow2.f32 %v3003_v17  ;;  %v7987_v17 = vmov 0.0  }
 0x328   :  { %2967 = vmax.xlane.f32.xlu1 %v2966_v15 }
 0x32c   :  { %v2881_v25 = vpop.xlane.xlu0 %2880 }
 0x32d   :  { %v2971_v9 = vsub.f32 %v7417_v60, %v2881_v25 }
 0x32f   :  { %v7570_v16 = vpop.eup %6659  ;;  %v3005_v51 = vmul.f32 1.442695, %v2971_v9 }
 0x330   :  { %v2893_v18 = vpop.xlane.xlu1 %2892  ;;  %6351 = vmatmul.mubr.msk.f32.vlgmr.msra.gmra.mrb[42].mxu0 %vm504_vm1, %v7570_v16  ;;  %v2884_v0 = vpop.xlane.xlu0 %2883 }
 0x331   :  { %6661 = vpow2.f32 %v3005_v51  ;;  %6359 = vmatpush3.msra.mxu0 %v427_v35  ;;  %v2972_v53 = vsub.f32 %v7421_v63, %v2884_v0  ;;  %6360 = vmatprep.mubr.msk.f32.mxu0 %vm6894_vm0, %v7987_v17  ;;  %v2975_v25 = vsub.f32 %v7423_v1, %v2893_v18 }
 0x332   :  { %6368 = vmatprep.subr.mxu0 %v7987_v17 }
 0x333   :  { %v3007_v24 = vmul.f32 1.442695, %v2972_v53 }
 0x334   :  { %v2899_v59 = vpop.xlane.xlu1 %2898 }
 0x335   :  { %6663 = vpow2.f32 %v3007_v24  ;;  %v2977_v23 = vsub.f32 %v7431_v7, %v2899_v59 }
 0x337   :  { %494 = vrot.lane.b32.xlu0 %v7167_v50, %s6891_s21 }
 0x338   :  { %v2905_v60 = vpop.xlane.xlu1 %2904  ;;  %v2890_v9 = vpop.xlane.xlu0 %2889 }
 0x339   :  { %v2974_v12 = vsub.f32 %v7441_v13, %v2890_v9  ;;  %500 = vrot.lane.b32.xlu1 %v7167_v50, %s6888_s8  ;;  %v2979_v1 = vsub.f32 %v7443_v14, %v2905_v60 }
 0x33b   :  { %v7583_v51 = vpop.eup %6661  ;;  %v3011_v63 = vmul.f32 1.442695, %v2974_v12  ;;  %v3013_v12 = vmul.f32 1.442695, %v2975_v25  ;;  %v3021_v7 = vmul.f32 1.442695, %v2979_v1 }
 0x33c   :  { %v2887_v35 = vpop.xlane.xlu1 %2886  ;;  %v2896_v15 = vpop.xlane.xlu0 %2895  ;;  %6356 = vmatmul.mubr.msk.f32.vlgmr.msra.gmra.mrb[30].mxu1 %vm504_vm1, %v7583_v51 }
 0x33d   :  { %v2973_v0 = vsub.f32 %v7429_v6, %v2887_v35  ;;  %v2976_v53 = vsub.f32 %v7450_v21, %v2896_v15  ;;  %6364 = vmatpush3.msra.mxu1 %v7386_v41  ;;  %6365 = vmatprep.mubr.msk.f32.mxu1 %vm6894_vm0, %v7987_v17  ;;  %6665 = vpow2.f32 %v3011_v63  ;;  %v3017_v41 = vmul.f32 1.442695, %v2977_v23 }
 0x33e   :  { %6373 = vmatprep.subr.mxu1 %v7987_v17 }
 0x33f   :  { %v3009_v13 = vmul.f32 1.442695, %v2973_v0  ;;  %v3015_v24 = vmul.f32 1.442695, %v2976_v53  ;;  %v7594_v9 = vpop.eup %6663 }
 0x340   :  { %6361 = vmatmul.mubr.msk.f32.vlgmr.msra.gmra.mrb[44].mxu0 %vm504_vm1, %v7594_v9  ;;  %v2911_v21 = vpop.xlane.xlu1 %2910 }
 0x341   :  { %6667 = vpow2.f32 %v3009_v13  ;;  %6369 = vmatpush3.msra.mxu0 %v7518_v62  ;;  %6370 = vmatprep.mubr.msk.f32.mxu0 %vm6894_vm0, %v7987_v17  ;;  %v2981_v59 = vsub.f32 %v7452_v22, %v2911_v21 }
 0x342   :  { %6669 = vpow2.f32 %v3015_v24  ;;  %6378 = vmatprep.subr.mxu0 %v7987_v17 }
 0x343   :  { %6671 = vpow2.f32 %v3013_v12  ;;  %v3025_v22 = vmul.f32 1.442695, %v2981_v59 }
 0x344   :  { %6673 = vpow2.f32 %v3017_v41  ;;  %v2917_v60 = vpop.xlane.xlu1 %2916 }
 0x345   :  { %v2923_v6 = vpop.xlane.xlu0 %2922  ;;  %6675 = vpow2.f32 %v3021_v7  ;;  %v2983_v25 = vsub.f32 %v7460_v28, %v2917_v60 }
 0x346   :  { %v2985_v53 = vsub.f32 %v7466_v33, %v2923_v6 }
 0x347   :  { %v7604_v18 = vpop.eup %6665  ;;  %v3029_v0 = vmul.f32 1.442695, %v2983_v25 }
 0x348   :  { %6371 = vmatmul.mubr.msk.f32.vlgmr.msra.gmra.mrb[46].mxu0 %vm504_vm1, %v7604_v18  ;;  %v3033_v24 = vmul.f32 1.442695, %v2985_v53 }
 0x349   :  { %v2902_v62 = vpop.xlane.xlu0 %2901  ;;  %6379 = vmatpush3.msra.mxu0 %v7388_v42  ;;  %6380 = vmatprep.mubr.msk.f32.mxu0 %vm6894_vm0, %v7987_v17 }
 0x34a   :  { %v2978_v63 = vsub.f32 %v7458_v27, %v2902_v62  ;;  %6388 = vmatprep.subr.mxu0 %v7987_v17 }
 0x34b   :  { %v7613_v14 = vpop.eup %6667 }
 0x34c   :  { %v7616_v23 = vpop.eup %6669  ;;  %v3019_v35 = vmul.f32 1.442695, %v2978_v63  ;;  %6366 = vmatmul.mubr.msk.f32.vlgmr.msra.gmra.mrb[32].mxu1 %vm504_vm1, %v7613_v14 }
 0x34d   :  { %6374 = vmatpush3.msra.mxu1 %v7530_v26  ;;  %6381 = vmatmul.mubr.msk.f32.vlgmr.msra.gmra.mrb[48].mxu0 %vm504_vm1, %v7616_v23  ;;  %v2908_v42 = vpop.xlane.xlu0 %2907  ;;  %v6672_v15 = vpop.eup %6671 }
 0x34e   :  { %6677 = vpow2.f32 %v3019_v35  ;;  %6389 = vmatpush3.msra.mxu0 %v7536_v34  ;;  %v2980_v27 = vsub.f32 %v7464_v32, %v2908_v42  ;;  %6375 = vmatprep.mubr.msk.f32.mxu1 %vm6894_vm0, %v7987_v17  ;;  %v6674_v34 = vpop.eup %6673 }
 0x34f   :  { %6383 = vmatprep.subr.mxu1 %v7987_v17  ;;  %6390 = vmatprep.mubr.msk.f32.mxu0 %vm6894_vm0, %v7987_v17  ;;  %6679 = vpow2.f32 %v3025_v22 }
 0x350   :  { %v3023_v26 = vmul.f32 1.442695, %v2980_v27  ;;  %6376 = vmatmul.mubr.msk.f32.vlgmr.msra.gmra.mrb[34].mxu1 %vm504_vm1, %v6672_v15  ;;  %6398 = vmatprep.subr.mxu0 %v7987_v17 }
 0x351   :  { %6384 = vmatpush3.msra.mxu1 %v7534_v31  ;;  %v2914_v32 = vpop.xlane.xlu0 %2913  ;;  %6385 = vmatprep.mubr.msk.f32.mxu1 %vm6894_vm0, %v7987_v17  ;;  %v3068_v31 = vsel %vm504_vm1, %v7570_v16, 0.0 }
 0x352   :  { %6681 = vpow2.f32 %v3023_v26  ;;  %v2982_v28 = vsub.f32 %v7472_v39, %v2914_v32  ;;  %6393 = vmatprep.subr.mxu1 %v7987_v17  ;;  %v6676_v39 = vpop.eup %6675  ;;  %v3080_v32 = vsel %vm504_vm1, %v7604_v18, 0.0  ;;  %v3086_v18 = vsel %vm504_vm1, %v7616_v23, 0.0 }
 0x354   :  { %v3027_v13 = vmul.f32 1.442695, %v2982_v28  ;;  %6386 = vmatmul.mubr.msk.f32.vlgmr.msra.gmra.mrb[36].mxu1 %vm504_vm1, %v6674_v34 }
 0x355   :  { %6394 = vmatpush3.msra.mxu1 %v7390_v43  ;;  %6395 = vmatprep.mubr.msk.f32.mxu1 %vm6894_vm0, %v7987_v17  ;;  %v3083_v43 = vsel %vm504_vm1, %v6672_v15, 0.0 }
 0x356   :  { %6683 = vpow2.f32 %v3027_v13  ;;  %3069 = vadd.xlane.f32.xlu0 %v3068_v31  ;;  %6403 = vmatprep.subr.mxu1 %v7987_v17 }
 0x357   :  { %6685 = vpow2.f32 %v3029_v0 }
 0x358   :  { %v7646_v12 = vpop.eup %6677  ;;  %6396 = vmatmul.mubr.msk.f32.vlgmr.msra.gmra.mrb[38].mxu1 %vm504_vm1, %v6676_v39  ;;  %6687 = vpow2.f32 %v3033_v24 }
 0x359   :  { %6391 = vmatmul.mubr.msk.f32.vlgmr.msra.gmra.mrb[50].mxu0 %vm504_vm1, %v7646_v12  ;;  %6404 = vmatpush3.msra.mxu1 %v7392_v44  ;;  %v6680_v33 = vpop.eup %6679  ;;  %v3071_v44 = vsel %vm504_vm1, %v7583_v51, 0.0  ;;  %v3074_v51 = vsel %vm504_vm1, %v7594_v9, 0.0  ;;  %v3092_v23 = vsel %vm504_vm1, %v7646_v12, 0.0 }
 0x35a   :  { %6399 = vmatpush3.msra.mxu0 %v7538_v36  ;;  %3084 = vadd.xlane.f32.xlu0 %v3083_v43  ;;  %v3089_v36 = vsel %vm504_vm1, %v6674_v34, 0.0 }
 0x35b   :  { %6400 = vmatprep.mubr.msk.f32.mxu0 %vm6894_vm0, %v7987_v17  ;;  %6405 = vmatprep.mubr.msk.f32.mxu1 %vm6894_vm0, %v7987_v17 }
 0x35c   :  { %v7658_v16 = vpop.eup %6681  ;;  %6408 = vmatprep.subr.mxu0 %v7987_v17  ;;  %6413 = vmatprep.subr.mxu1 %v7987_v17 }
 0x35d   :  { %6401 = vmatmul.mubr.msk.f32.vlgmr.msra.gmra.mrb[52].mxu0 %vm504_vm1, %v7658_v16  ;;  %6406 = vmatmul.mubr.msk.f32.vlgmr.msra.gmra.mrb[40].mxu1 %vm504_vm1, %v6680_v33  ;;  %v3098_v24 = vsel %vm504_vm1, %v7658_v16, 0.0 }
 0x35e   :  { %6409 = vmatpush3.msra.mxu0 %v7542_v38  ;;  %6414 = vmatpush3.msra.mxu1 %v7394_v37 }
 0x35f   :  { %3072 = vadd.xlane.f32.xlu1 %v3071_v44  ;;  %3090 = vadd.xlane.f32.xlu0 %v3089_v36 }
 0x360   :  { %v7670_v41 = vpop.eup %6683  ;;  %6410 = vmatprep.mubr.msk.f32.mxu0 %vm6894_vm0, %v7987_v17  ;;  %6415 = vmatprep.mubr.msk.f32.mxu1 %vm6894_vm0, %v7987_v17  ;;  %v2929_v1 = vpop.xlane.xlu1 %2928 }
 0x361   :  { %v7676_v6 = vpop.eup %6685  ;;  %6418 = vmatprep.subr.mxu0 %v7987_v17  ;;  %6423 = vmatprep.subr.mxu1 %v7987_v17  ;;  %v2987_v37 = vsub.f32 %v7484_v2, %v2929_v1 }
 0x362   :  { %6411 = vmatmul.mubr.msk.f32.vlgmr.msra.gmra.mrb[54].mxu0 %vm504_vm1, %v7670_v41  ;;  %6416 = vmatmul.mubr.msk.f32.vlgmr.msra.gmra.mrb[42].mxu1 %vm504_vm1, %v7676_v6  ;;  %v7691_v2 = vpop.eup %6687  ;;  %v3107_v36 = vsel %vm504_vm1, %v7676_v6, 0.0 }
 0x363   :  { %6419 = vmatpush3.msra.mxu0 %v7544_v57  ;;  %6424 = vmatpush3.msra.mxu1 %v7167_v50  ;;  %v3037_v38 = vmul.f32 1.442695, %v2987_v37  ;;  %v3095_v57 = vsel %vm504_vm1, %v6676_v39, 0.0 }
 0x364   :  { %3075 = vadd.xlane.f32.xlu0 %v3074_v51  ;;  %6425 = vmatprep.mubr.msk.f32.mxu1 %vm6894_vm0, %v7987_v17  ;;  %v2935_v21 = vpop.xlane.xlu1 %2934 }
 0x365   :  { %6689 = vpow2.f32 %v3037_v38  ;;  %6433 = vmatprep.subr.mxu1 %v7987_v17  ;;  %v2989_v7 = vsub.f32 %v7490_v10, %v2935_v21  ;;  %6420 = vmatprep.mubr.msk.f32.mxu0 %vm6894_vm0, %v7987_v17 }
 0x366   :  { %6426 = vmatmul.mubr.msk.f32.vlgmr.msra.gmra.mrb[44].mxu1 %vm504_vm1, %v7691_v2  ;;  %6428 = vmatprep.subr.mxu0 %v7987_v17 }
 0x367   :  { %6434 = vmatpush3.msra.mxu1 %v7398_v46  ;;  %v3041_v50 = vmul.f32 1.442695, %v2989_v7  ;;  %6435 = vmatprep.mubr.msk.f32.mxu1 %vm6894_vm0, %v7987_v17  ;;  %v3077_v46 = vsel %vm504_vm1, %v7613_v14, 0.0 }
 0x368   :  { %3096 = vadd.xlane.f32.xlu0 %v3095_v57  ;;  %v2920_v9 = vpop.xlane.xlu1 %2919  ;;  %v2941_v59 = vpop.xlane.xlu0 %2940  ;;  %6443 = vmatprep.subr.mxu1 %v7987_v17 }
 0x369   :  { %6691 = vpow2.f32 %v3041_v50  ;;  %v2984_v10 = vsub.f32 %v7476_v56, %v2920_v9  ;;  %v2991_v62 = vsub.f32 %v7496_v19, %v2941_v59  ;;  %v3101_v56 = vsel %vm504_vm1, %v6680_v33, 0.0 }
 0x36b   :  { %v3031_v63 = vmul.f32 1.442695, %v2984_v10  ;;  %v3045_v60 = vmul.f32 1.442695, %v2991_v62 }
 0x36c   :  { %3078 = vadd.xlane.f32.xlu0 %v3077_v46  ;;  %v2926_v35 = vpop.xlane.xlu1 %2925 }
 0x36d   :  { %6693 = vpow2.f32 %v3031_v63  ;;  %v2986_v22 = vsub.f32 %v7482_v61, %v2926_v35  ;;  %v2947_v42 = vpop.xlane.xlu0 %2946 }
 0x36e   :  { %6695 = vpow2.f32 %v3045_v60  ;;  %v2993_v27 = vsub.f32 %v7506_v30, %v2947_v42  ;;  %v7988_v60 = vld [vmem:[#allocation15_spill] sm:$0xff] }
 0x36f   :  { %v6690_v15 = vpop.eup %6689  ;;  %v3035_v25 = vmul.f32 1.442695, %v2986_v22 }
 0x370   :  { %v3049_v26 = vmul.f32 1.442695, %v2993_v27  ;;  %3102 = vadd.xlane.f32.xlu0 %v3101_v56  ;;  %6436 = vmatmul.mubr.msk.f32.vlgmr.msra.gmra.mrb[46].mxu1 %vm504_vm1, %v6690_v15  ;;  %v3119_v19 = vsel %vm504_vm1, %v6690_v15, 0.0 }
 0x371   :  { %6697 = vpow2.f32 %v3035_v25  ;;  %6444 = vmatpush3.msra.mxu1 %v7400_v47  ;;  %v2953_v14 = vpop.xlane.xlu0 %2952  ;;  %3120 = vadd.xlane.f32.xlu1 %v3119_v19  ;;  %v7990_v25 = vld [vmem:[#allocation16_spill] sm:$0xff] }
 0x372   :  { %6699 = vpow2.f32 %v3049_v26  ;;  %v2995_v61 = vsub.f32 %v7514_v55, %v2953_v14  ;;  %6445 = vmatprep.mubr.msk.f32.mxu1 %vm6894_vm0, %v7987_v17  ;;  %6453 = vmatprep.subr.mxu1 %v7987_v17  ;;  %v7991_v26 = vld [vmem:[#allocation17_spill] sm:$0xff] }
 0x373   :  { %v6692_v30 = vpop.eup %6691 }
 0x374   :  { %v3053_v28 = vmul.f32 1.442695, %v2995_v61  ;;  %3081 = vadd.xlane.f32.xlu0 %v3080_v32  ;;  %6446 = vmatmul.mubr.msk.f32.vlgmr.msra.gmra.mrb[48].mxu1 %vm504_vm1, %v6692_v30  ;;  %v3125_v47 = vsel %vm504_vm1, %v6692_v30, 0.0  ;;  %v7992_v30 = vld [vmem:[#allocation18_spill] sm:$0xff] }
 0x375   :  { %6454 = vmatpush3.msra.mxu1 %v7404_v49  ;;  %v2932_v34 = vpop.xlane.xlu0 %2931  ;;  %3126 = vadd.xlane.f32.xlu1 %v3125_v47 }
 0x376   :  { %6701 = vpow2.f32 %v3053_v28  ;;  %v2988_v55 = vsub.f32 %v7486_v3, %v2932_v34  ;;  %6455 = vmatprep.mubr.msk.f32.mxu1 %vm6894_vm0, %v7987_v17  ;;  %6463 = vmatprep.subr.mxu1 %v7987_v17 }
 0x377   :  { %v6694_v0 = vpop.eup %6693 }
 0x378   :  { %v6696_v53 = vpop.eup %6695  ;;  %v3039_v13 = vmul.f32 1.442695, %v2988_v55  ;;  %3087 = vadd.xlane.f32.xlu0 %v3086_v18  ;;  %6421 = vmatmul.mubr.msk.f32.vlgmr.msra.gmra.mrb[56].mxu0 %vm504_vm1, %v6694_v0 }
 0x379   :  { %6429 = vmatpush3.msra.mxu0 %v7396_v45  ;;  %6456 = vmatmul.mubr.msk.f32.vlgmr.msra.gmra.mrb[50].mxu1 %vm504_vm1, %v6696_v53  ;;  %v3131_v49 = vsel %vm504_vm1, %v6696_v53, 0.0  ;;  %v483_v43 = vpop.permute.xlu0 %482 }
 0x37a   :  { %6703 = vpow2.f32 %v3039_v13  ;;  %6464 = vmatpush3.msra.mxu1 %v7408_v52  ;;  %3132 = vadd.xlane.f32.xlu1 %v3131_v49  ;;  %v7735_v3 = vpop.f32.mrb[28].mxu1 }
 0x37b   :  { %v6698_v31 = vpop.eup %6697  ;;  %v6347_v39 = vpop.f32.mrb[29].mxu1  ;;  %6430 = vmatprep.mubr.msk.f32.mxu0 %vm6894_vm0, %v7987_v17  ;;  %6438 = vmatprep.subr.mxu0 %v7987_v17 }
 0x37c   :  { %v6700_v45 = vpop.eup %6699  ;;  %3093 = vadd.xlane.f32.xlu0 %v3092_v23  ;;  %6465 = vmatprep.mubr.msk.f32.mxu1 %vm6894_vm0, %v7987_v17  ;;  %v3116_v16 = vsel %vm504_vm1, %v6698_v31, 0.0 }
 0x37d   :  { %6473 = vmatprep.subr.mxu1 %v7987_v17  ;;  %6431 = vmatmul.mubr.msk.f32.vlgmr.msra.gmra.mrb[58].mxu0 %vm504_vm1, %v6698_v31  ;;  %v3137_v52 = vsel %vm504_vm1, %v6700_v45, 0.0  ;;  %v3113_v31 = vsel %vm504_vm1, %v7691_v2, 0.0 }
 0x37e   :  { %6439 = vmatpush3.msra.mxu0 %v7546_v58  ;;  %6466 = vmatmul.mubr.msk.f32.vlgmr.msra.gmra.mrb[52].mxu1 %vm504_vm1, %v6700_v45  ;;  %v3104_v58 = vsel %vm504_vm1, %v7670_v41, 0.0  ;;  %v489_v41 = vpop.permute.xlu1 %488 }
 0x37f   :  { %6474 = vmatpush3.msra.mxu1 %v7412_v54  ;;  %3138 = vadd.xlane.f32.xlu1 %v3137_v52  ;;  %v3065_v54 = vsel %vm504_vm1, %v7433_v8, 0.0 }
 0x380   :  { %v6702_v12 = vpop.eup %6701  ;;  %3099 = vadd.xlane.f32.xlu0 %v3098_v24  ;;  %6475 = vmatprep.mubr.msk.f32.mxu1 %vm6894_vm0, %v7987_v17 }
 0x381   :  { %6483 = vmatprep.subr.mxu1 %v7987_v17  ;;  %6440 = vmatprep.mubr.msk.f32.mxu0 %vm6894_vm0, %v7987_v17  ;;  %v3143_v8 = vsel %vm504_vm1, %v6702_v12, 0.0 }
 0x382   :  { %6476 = vmatmul.mubr.msk.f32.vlgmr.msra.gmra.mrb[54].mxu1 %vm504_vm1, %v6702_v12  ;;  %6448 = vmatprep.subr.mxu0 %v7987_v17 }
 0x383   :  { %6484 = vmatpush3.msra.mxu1 %v483_v43  ;;  %3066 = vadd.xlane.f32.xlu1 %v3065_v54 }
 0x384   :  { %v6704_v33 = vpop.eup %6703  ;;  %3105 = vadd.xlane.f32.xlu0 %v3104_v58  ;;  %6485 = vmatprep.mubr.msk.f32.mxu1 %vm6894_vm0, %v7987_v17 }
 0x385   :  { %6441 = vmatmul.mubr.msk.f32.vlgmr.msra.gmra.mrb[60].mxu0 %vm504_vm1, %v6704_v33  ;;  %6493 = vmatprep.subr.mxu1 %v7987_v17  ;;  %v3122_v44 = vsel %vm504_vm1, %v6704_v33, 0.0 }
 0x386   :  { %6449 = vmatpush3.msra.mxu0 %v7402_v48  ;;  %6450 = vmatprep.mubr.msk.f32.mxu0 %vm6894_vm0, %v7987_v17  ;;  %v3110_v48 = vsel %vm504_vm1, %v6694_v0, 0.0 }
 0x387   :  { %3144 = vadd.xlane.f32.xlu1 %v3143_v8  ;;  %6458 = vmatprep.subr.mxu0 %v7987_v17 }
 0x388   :  { %3117 = vadd.xlane.f32.xlu0 %v3116_v16 }
 0x38b   :  { %3123 = vadd.xlane.f32.xlu1 %v3122_v44 }
 0x38c   :  { %3108 = vadd.xlane.f32.xlu0 %v3107_v36 }
 0x390   :  { %3111 = vadd.xlane.f32.xlu0 %v3110_v48 }
 0x3a1   :  { %v2938_v1 = vpop.xlane.xlu1 %2937 }
 0x3a2   :  { %v2990_v37 = vsub.f32 %v7492_v11, %v2938_v1 }
 0x3a4   :  { %v3043_v38 = vmul.f32 1.442695, %v2990_v37 }
 0x3a5   :  { %v2944_v51 = vpop.xlane.xlu1 %2943 }
 0x3a6   :  { %6705 = vpow2.f32 %v3043_v38  ;;  %v2992_v21 = vsub.f32 %v7498_v20, %v2944_v51 }
 0x3a8   :  { %v3047_v7 = vmul.f32 1.442695, %v2992_v21 }
 0x3a9   :  { %v2950_v50 = vpop.xlane.xlu1 %2949 }
 0x3aa   :  { %6707 = vpow2.f32 %v3047_v7  ;;  %v2994_v57 = vsub.f32 %v7504_v29, %v2950_v50  ;;  %v2959_v9 = vpop.xlane.xlu0 %2958 }
 0x3ab   :  { %v2997_v6 = vsub.f32 %v7522_v5, %v2959_v9  ;;  %v7989_v5 = vld [vmem:[#allocation14_spill] sm:$0xff] }
 0x3ac   :  { %v3051_v59 = vmul.f32 1.442695, %v2994_v57 }
 0x3ad   :  { %v3057_v10 = vmul.f32 1.442695, %v2997_v6  ;;  %v2956_v62 = vpop.xlane.xlu1 %2955 }
 0x3ae   :  { %6709 = vpow2.f32 %v3051_v59  ;;  %v2996_v63 = vsub.f32 %v7512_v40, %v2956_v62  ;;  %v2965_v11 = vpop.xlane.xlu0 %2964 }
 0x3af   :  { %6711 = vpow2.f32 %v3057_v10  ;;  %v2999_v46 = vsub.f32 %v7988_v60, %v2965_v11 }
 0x3b0   :  { %v6706_v35 = vpop.eup %6705  ;;  %v3055_v20 = vmul.f32 1.442695, %v2996_v63 }
 0x3b1   :  { %v3061_v22 = vmul.f32 1.442695, %v2999_v46  ;;  %v2962_v42 = vpop.xlane.xlu1 %2961  ;;  %6451 = vmatmul.mubr.msk.f32.vlgmr.msra.gmra.mrb[62].mxu0 %vm504_vm1, %v6706_v35  ;;  %v3128_v34 = vsel %vm504_vm1, %v6706_v35, 0.0 }
 0x3b2   :  { %6713 = vpow2.f32 %v3055_v20  ;;  %v2998_v29 = vsub.f32 %v7520_v4, %v2962_v42  ;;  %6459 = vmatpush3.msra.mxu0 %v7989_v5  ;;  %6460 = vmatprep.mubr.msk.f32.mxu0 %vm6894_vm0, %v7987_v17  ;;  %v495_v61 = vpop.permute.xlu0 %494 }
 0x3b3   :  { %6715 = vpow2.f32 %v3061_v22  ;;  %6468 = vmatprep.subr.mxu0 %v7987_v17 }
 0x3b4   :  { %v6708_v40 = vpop.eup %6707  ;;  %v3059_v27 = vmul.f32 1.442695, %v2998_v29 }
 0x3b5   :  { %v2968_v15 = vpop.xlane.xlu1 %2967  ;;  %6461 = vmatmul.mubr.msk.f32.vlgmr.msra.gmra.mrb[64].mxu0 %vm504_vm1, %v6708_v40  ;;  %v3134_v49 = vsel %vm504_vm1, %v6708_v40, 0.0 }
 0x3b6   :  { %6717 = vpow2.f32 %v3059_v27  ;;  %v3000_v56 = vsub.f32 %v7990_v25, %v2968_v15  ;;  %6469 = vmatpush3.msra.mxu0 %v7991_v26  ;;  %6470 = vmatprep.mubr.msk.f32.mxu0 %vm6894_vm0, %v7987_v17 }
 0x3b7   :  { %6478 = vmatprep.subr.mxu0 %v7987_v17 }
 0x3b8   :  { %v6710_v4 = vpop.eup %6709  ;;  %v3063_v19 = vmul.f32 1.442695, %v3000_v56 }
 0x3b9   :  { %v6712_v14 = vpop.eup %6711  ;;  %6471 = vmatmul.mubr.msk.f32.vlgmr.msra.gmra.mrb[66].mxu0 %vm504_vm1, %v6710_v4  ;;  %v501_v0 = vpop.permute.xlu1 %500  ;;  %v3140_v23 = vsel %vm504_vm1, %v6710_v4, 0.0 }
 0x3ba   :  { %6719 = vpow2.f32 %v3063_v19  ;;  %6479 = vmatpush3.msra.mxu0 %v7992_v30  ;;  %6486 = vmatmul.mubr.msk.f32.vlgmr.msra.gmra.mrb[56].mxu1 %vm504_vm1, %v6712_v14  ;;  %v3149_v32 = vsel %vm504_vm1, %v6712_v14, 0.0 }
 0x3bb   :  { %6494 = vmatpush3.msra.mxu1 %v495_v61  ;;  %3150 = vadd.xlane.f32.xlu1 %v3149_v32 }
 0x3bc   :  { %v6714_v28 = vpop.eup %6713  ;;  %6480 = vmatprep.mubr.msk.f32.mxu0 %vm6894_vm0, %v7987_v17  ;;  %6488 = vmatprep.subr.mxu0 %v7987_v17 }
 0x3bd   :  { %v6716_v47 = vpop.eup %6715  ;;  %6495 = vmatprep.mubr.msk.f32.mxu1 %vm6894_vm0, %v7987_v17  ;;  %6481 = vmatmul.mubr.msk.f32.vlgmr.msra.gmra.mrb[68].mxu0 %vm504_vm1, %v6714_v28  ;;  %v3146_v39 = vsel %vm504_vm1, %v6714_v28, 0.0 }
 0x3be   :  { %6489 = vmatpush3.msra.mxu0 %v489_v41  ;;  %6496 = vmatmul.mubr.msk.f32.vlgmr.msra.gmra.mrb[58].mxu1 %vm504_vm1, %v6716_v47  ;;  %v3155_v18 = vsel %vm504_vm1, %v6716_v47, 0.0 }
 0x3bf   :  { %3129 = vadd.xlane.f32.xlu1 %v3128_v34  ;;  %6490 = vmatprep.mubr.msk.f32.mxu0 %vm6894_vm0, %v7987_v17 }
 0x3c0   :  { %v6718_v55 = vpop.eup %6717  ;;  %6498 = vmatprep.subr.mxu0 %v7987_v17 }
 0x3c1   :  { %6491 = vmatmul.mubr.msk.f32.vlgmr.msra.gmra.mrb[70].mxu0 %vm504_vm1, %v6718_v55 }
 0x3c2   :  { %6499 = vmatpush3.msra.mxu0 %v501_v0  ;;  %6500 = vmatprep.mubr.msk.f32.mxu0 %vm6894_vm0, %v7987_v17  ;;  %v3152_v17 = vsel %vm504_vm1, %v6718_v55, 0.0  ;;  %vm5725_vm0 = vcmask 1048512  }
 0x3c3   :  { %3156 = vadd.xlane.f32.xlu1 %v3155_v18 }
 0x3c4   :  { %v6720_v53 = vpop.eup %6719 }
 0x3c5   :  { %6501 = vmatmul.mubr.msk.f32.vlgmr.msra.gmra.mrb[72].mxu0 %vm504_vm1, %v6720_v53  ;;  %v3158_v13 = vsel %vm504_vm1, %v6720_v53, 0.0 }
 0x3c6   :  { %3159 = vadd.xlane.f32.xlu0 %v3158_v13 }
 0x3c7   :  { %3135 = vadd.xlane.f32.xlu1 %v3134_v49 }
 0x3ca   :  { %3114 = vadd.xlane.f32.xlu0 %v3113_v31 }
 0x3cb   :  { %3141 = vadd.xlane.f32.xlu1 %v3140_v23 }
 0x3cf   :  { %3147 = vadd.xlane.f32.xlu1 %v3146_v39 }
 0x3d3   :  { %3153 = vadd.xlane.f32.xlu1 %v3152_v17 }
 0x3e3   :  { %v3070_v45 = vpop.xlane.xlu0 %3069 }
 0x3e4   :  { %6721 = vrcp.f32 %v3070_v45 }
 0x3e7   :  { %v3085_v52 = vpop.xlane.xlu0 %3084 }
 0x3ec   :  { %v3091_v24 = vpop.xlane.xlu0 %3090  ;;  %v3073_v12 = vpop.xlane.xlu1 %3072 }
 0x3ed   :  { %6723 = vrcp.f32 %v3073_v12 }
 0x3ee   :  { %v6722_v2 = vpop.eup %6721 }
 0x3f1   :  { %v3076_v43 = vpop.xlane.xlu0 %3075 }
 0x3f2   :  { %6725 = vrcp.f32 %v3076_v43 }
 0x3f5   :  { %v3097_v33 = vpop.xlane.xlu0 %3096 }
 0x3f7   :  { %v6724_v1 = vpop.eup %6723 }
 0x3f9   :  { %v3079_v48 = vpop.xlane.xlu0 %3078 }
 0x3fc   :  { %v6726_v50 = vpop.eup %6725 }
 0x3fd   :  { %v7831_v37 = vpop.xlane.xlu0 %3102 }
 0x3fe   :  { %v7822_v54 = vpop.xlane.xlu1 %3120 }
 0x401   :  { %v3082_v59 = vpop.xlane.xlu0 %3081 }
 0x402   :  { %v7824_v58 = vpop.xlane.xlu1 %3126 }
 0x403   :  { %v3303_v8 = vpop.f32.mrb[42].mxu0 }
 0x404   :  { %v5530_v16 = vmul.f32 %v6722_v2, %v3303_v8  ;;  %v6352_v44 = vpop.f32.mrb[43].mxu0 }
 0x405   :  { %v3088_v60 = vpop.xlane.xlu0 %3087 }
 0x406   :  { %5565 = vrot.lane.b32.xlu1 %v5530_v16, %s6888_s8 }
 0x407   :  { %v7827_v36 = vpop.xlane.xlu1 %3132 }
 0x40c   :  { %v7829_v41 = vpop.xlane.xlu1 %3138 }
 0x40f   :  { %v3376_v38 = vpop.f32.mrb[30].mxu1 }
 0x410   :  { %v3067_v51 = vpop.xlane.xlu1 %3066  ;;  %v5531_v21 = vmul.f32 %v6724_v1, %v3376_v38  ;;  %v6357_v7 = vpop.f32.mrb[31].mxu1 }
 0x411   :  { %6727 = vrcp.f32 %v3067_v51 }
 0x412   :  { %5576 = vrot.lane.b32.xlu1 %v5531_v21, %s6891_s21  ;;  %6729 = vrcp.f32 %v3079_v48 }
 0x413   :  { %v3449_v57 = vpop.f32.mrb[44].mxu0  ;;  %6731 = vrcp.f32 %v3082_v59 }
 0x414   :  { %v5532_v9 = vmul.f32 %v6726_v50, %v3449_v57  ;;  %v6362_v6 = vpop.f32.mrb[45].mxu0  ;;  %6733 = vrcp.f32 %v3085_v52 }
 0x415   :  { %6735 = vrcp.f32 %v3088_v60 }
 0x416   :  { %5587 = vrot.lane.b32.xlu0 %v5532_v9, %s6907_s11  ;;  %6737 = vrcp.f32 %v3091_v24 }
 0x41b   :  { %v6728_v10 = vpop.eup %6727  ;;  %v3595_v63 = vpop.f32.mrb[46].mxu0 }
 0x41c   :  { %v5529_v62 = vmul.f32 %v6728_v10, %v7735_v3  ;;  %v6372_v11 = vpop.f32.mrb[47].mxu0  ;;  %v6730_v46 = vpop.eup %6729 }
 0x41d   :  { %v6732_v5 = vpop.eup %6731  ;;  %v3094_v3 = vpop.xlane.xlu0 %3093 }
 0x41e   :  { %5561 = vst.msk [vmem:[#allocation2] sm:$0xff] %vm504_vm1, %v5529_v62  ;;  %v5534_v27 = vmul.f32 %v6732_v5, %v3595_v63  ;;  %v6734_v25 = vpop.eup %6733  ;;  %6739 = vrcp.f32 %v3094_v3 }
 0x41f   :  { %v3522_v35 = vpop.f32.mrb[32].mxu1  ;;  %v6736_v19 = vpop.eup %6735  ;;  %6741 = vrcp.f32 %v3097_v33 }
 0x420   :  { %v5533_v20 = vmul.f32 %v6730_v46, %v3522_v35  ;;  %v3741_v22 = vpop.f32.mrb[48].mxu0  ;;  %v6367_v42 = vpop.f32.mrb[33].mxu1 }
 0x421   :  { %v6382_v29 = vpop.f32.mrb[49].mxu0  ;;  %v5536_v61 = vmul.f32 %v6736_v19, %v3741_v22  ;;  %v3100_v47 = vpop.xlane.xlu0 %3099 }
 0x422   :  { %5598 = vrot.lane.b32.xlu0 %v5533_v20, %s6904_s30  ;;  %v6738_v34 = vpop.eup %6737  ;;  %6743 = vrcp.f32 %v3100_v47 }
 0x423   :  { %v3668_v40 = vpop.f32.mrb[34].mxu1  ;;  %6745 = vrcp.f32 %v7822_v54  ;;  %v3145_v54 = vpop.xlane.xlu1 %3144 }
 0x424   :  { %v6377_v15 = vpop.f32.mrb[35].mxu1  ;;  %v5535_v26 = vmul.f32 %v6734_v25, %v3668_v40  ;;  %6747 = vrcp.f32 %v7824_v58 }
 0x425   :  { %v3106_v8 = vpop.xlane.xlu0 %3105  ;;  %6749 = vrcp.f32 %v7827_v36 }
 0x426   :  { %5609 = vrot.lane.b32.xlu0 %v5534_v27, %s6906_s10 }
 0x427   :  { %v3814_v56 = vpop.f32.mrb[36].mxu1  ;;  %v3124_v36 = vpop.xlane.xlu1 %3123 }
 0x428   :  { %v6387_v4 = vpop.f32.mrb[37].mxu1  ;;  %v5537_v55 = vmul.f32 %v6738_v34, %v3814_v56  ;;  %v6740_v49 = vpop.eup %6739 }
 0x429   :  { %v6742_v52 = vpop.eup %6741  ;;  %v3118_v44 = vpop.xlane.xlu0 %3117 }
 0x42a   :  { %5620 = vrot.lane.b32.xlu0 %v5535_v26, %s6902_s28  ;;  %6751 = vrcp.f32 %v3118_v44 }
 0x42b   :  { %v3960_v14 = vpop.f32.mrb[38].mxu1  ;;  %6753 = vrcp.f32 %v7829_v41 }
 0x42c   :  { %v3887_v30 = vpop.f32.mrb[50].mxu0  ;;  %v6397_v32 = vpop.f32.mrb[39].mxu1  ;;  %v5539_v24 = vmul.f32 %v6742_v52, %v3960_v14  ;;  %6755 = vrcp.f32 %v7831_v37 }
 0x42d   :  { %v6392_v28 = vpop.f32.mrb[51].mxu0  ;;  %v5538_v31 = vmul.f32 %v6740_v49, %v3887_v30  ;;  %v6744_v2 = vpop.eup %6743  ;;  %6757 = vrcp.f32 %v3145_v54 }
 0x42e   :  { %5631 = vrot.lane.b32.xlu0 %v5536_v61, %s6905_s9  ;;  %v6746_v16 = vpop.eup %6745  ;;  %v3109_v50 = vpop.xlane.xlu0 %3108  ;;  %6759 = vrcp.f32 %v3106_v8  ;;  %v5730_v8 = vld [vmem:[#allocation8] sm:$0xff] }
 0x42f   :  { %v6748_v51 = vpop.eup %6747  ;;  %6761 = vrcp.f32 %v3124_v36 }
 0x430   :  { %v4033_v0 = vpop.f32.mrb[52].mxu0  ;;  %v7841_v18 = vpop.f32.mrb[40].mxu1  ;;  %6763 = vrcp.f32 %v3109_v50 }
 0x431   :  { %v6402_v53 = vpop.f32.mrb[53].mxu0  ;;  %v6407_v13 = vpop.f32.mrb[41].mxu1  ;;  %v5540_v33 = vmul.f32 %v6744_v2, %v4033_v0 }
 0x432   :  { %5642 = vrot.lane.b32.xlu0 %v5537_v55, %s6900_s26  ;;  %v6750_v9 = vpop.eup %6749  ;;  %v3112_v63 = vpop.xlane.xlu0 %3111 }
 0x433   :  { %6765 = vrcp.f32 %v3112_v63 }
 0x434   :  { %v6752_v11 = vpop.eup %6751 }
 0x435   :  { %v7844_v23 = vpop.f32.mrb[54].mxu0  ;;  %v7846_v39 = vpop.f32.mrb[42].mxu1 }
 0x436   :  { %v6412_v17 = vpop.f32.mrb[55].mxu0  ;;  %v6417_v45 = vpop.f32.mrb[43].mxu1  ;;  %5653 = vrot.lane.b32.xlu0 %v5538_v31, %s6903_s29 }
 0x437   :  { %v6754_v46 = vpop.eup %6753 }
 0x438   :  { %v6756_v5 = vpop.eup %6755 }
 0x439   :  { %v7850_v12 = vpop.f32.mrb[44].mxu1  ;;  %v6758_v40 = vpop.eup %6757  ;;  %v5541_v27 = vmul.f32 %v6756_v5, %v7841_v18 }
 0x43a   :  { %v6427_v43 = vpop.f32.mrb[45].mxu1  ;;  %5664 = vrot.lane.b32.xlu0 %v5539_v24, %s6898_s24  ;;  %v6760_v26 = vpop.eup %6759 }
 0x43b   :  { %v6762_v19 = vpop.eup %6761  ;;  %v5542_v61 = vmul.f32 %v6760_v26, %v7844_v23 }
 0x43c   :  { %v6764_v28 = vpop.eup %6763 }
 0x43d   :  { %v5543_v34 = vmul.f32 %v6764_v28, %v7846_v39  ;;  %v6766_v55 = vpop.eup %6765  ;;  %v5742_v28 = vld [vmem:[#allocation8 + $0x60] sm:$0xff] }
 0x43e   :  { %5675 = vrot.lane.b32.xlu0 %v5540_v33, %s6901_s27 }
 0x443   :  { %v4544_v48 = vpop.f32.mrb[46].mxu1 }
 0x444   :  { %v5547_v1 = vmul.f32 %v6746_v16, %v4544_v48  ;;  %v6437_v38 = vpop.f32.mrb[47].mxu1  ;;  %v5731_v16 = vld [vmem:[#allocation8 + $0x8] sm:$0xff] }
 0x445   :  { %v6602_v44 = vpack.c.bf16 %v5731_v16, %v5730_v8 }
 0x446   :  { %5578 = vrot.lane.b32.xlu1 %v5547_v1, %s6891_s21 }
 0x447   :  { %v4690_v21 = vpop.f32.mrb[48].mxu1  ;;  %6603 = vmatprep.subr.bf16.mxu1 %v6602_v44 }
 0x448   :  { %v5549_v7 = vmul.f32 %v6748_v51, %v4690_v21  ;;  %v6447_v58 = vpop.f32.mrb[49].mxu1  ;;  %v7861_v41 = vpop.xlane.xlu1 %3150  ;;  %6605 = vmatpush3.bf16.msra.mxu1 %v6602_v44 }
 0x449   :  { %v5733_v58 = vld [vmem:[#allocation8 + $0x18] sm:$0xff] }
 0x44b   :  { %v4325_v57 = vpop.f32.mrb[56].mxu0 }
 0x44c   :  { %v4836_v6 = vpop.f32.mrb[50].mxu1  ;;  %v6422_v10 = vpop.f32.mrb[57].mxu0  ;;  %v5544_v0 = vmul.f32 %v6766_v55, %v4325_v57  ;;  %v5744_v55 = vld [vmem:[#allocation8 + $0x70] sm:$0xff] }
 0x44d   :  { %v7859_v59 = vmul.f32 %v6750_v9, %v4836_v6  ;;  %v6457_v62 = vpop.f32.mrb[51].mxu1  ;;  %v3130_v3 = vpop.xlane.xlu1 %3129  ;;  %v5735_v10 = vld [vmem:[#allocation8 + $0x28] sm:$0xff] }
 0x450   :  { %v4471_v60 = vpop.f32.mrb[58].mxu0 }
 0x451   :  { %v5546_v35 = vmul.f32 %v6752_v11, %v4471_v60  ;;  %v4982_v20 = vpop.f32.mrb[52].mxu1  ;;  %v6432_v37 = vpop.f32.mrb[59].mxu0 }
 0x452   :  { %v7863_v22 = vmul.f32 %v6754_v46, %v4982_v20  ;;  %v6467_v42 = vpop.f32.mrb[53].mxu1  ;;  %v7875_v47 = vpop.xlane.xlu1 %3156  ;;  %v5736_v20 = vld [vmem:[#allocation8 + $0x30] sm:$0xff]  ;;  %v5737_v37 = vld [vmem:[#allocation8 + $0x38] sm:$0xff] }
 0x453   :  { %5567 = vrot.lane.b32.xlu0 %v5546_v35, %s6888_s8  ;;  %v7866_v29 = vpop.xlane.xlu0 %3159  ;;  %v6614_v42 = vpack.c.bf16 %v5737_v37, %v5736_v20  ;;  %v6791_v37 = vld [vmem:[%s7967_s0] sm:$0xff] }
 0x455   :  { %v5128_v15 = vpop.f32.mrb[54].mxu1 }
 0x456   :  { %v7869_v25 = vmul.f32 %v6758_v40, %v5128_v15  ;;  %v6477_v56 = vpop.f32.mrb[55].mxu1  ;;  %v3136_v53 = vpop.xlane.xlu1 %3135  ;;  %v5739_v15 = vld [vmem:[#allocation8 + $0x48] sm:$0xff] }
 0x457   :  { %5686 = vrot.lane.b32.xlu0 %v5541_v27, %s6899_s25  ;;  %v3115_v4 = vpop.xlane.xlu0 %3114 }
 0x458   :  { %v4617_v14 = vpop.f32.mrb[60].mxu0  ;;  %6767 = vrcp.f32 %v3115_v4 }
 0x459   :  { %v5548_v30 = vmul.f32 %v6762_v19, %v4617_v14  ;;  %v6442_v32 = vpop.f32.mrb[61].mxu0  ;;  %6769 = vrcp.f32 %v3130_v3  ;;  %v5740_v19 = vld [vmem:[#allocation8 + $0x50] sm:$0xff]  ;;  %v5741_v14 = vld [vmem:[#allocation8 + $0x58] sm:$0xff] }
 0x45a   :  { %v3142_v49 = vpop.xlane.xlu1 %3141  ;;  %6771 = vrcp.f32 %v3136_v53 }
 0x45b   :  { %5697 = vrot.lane.b32.xlu0 %v5542_v61, %s6897_s23  ;;  %5589 = vrot.lane.b32.xlu1 %v5548_v30, %s6907_s11  ;;  %6773 = vrcp.f32 %v3142_v49  ;;  %v6622_v61 = vpack.c.bf16 %v5741_v14, %v5740_v19 }
 0x45c   :  { %6775 = vrcp.f32 %v7866_v29 }
 0x45e   :  { %v3148_v31 = vpop.xlane.xlu1 %3147 }
 0x45f   :  { %5708 = vrot.lane.b32.xlu0 %v5543_v34, %s6895_s3  ;;  %5600 = vrot.lane.b32.xlu1 %v5549_v7, %s6904_s30  ;;  %v5732_v7 = vld [vmem:[#allocation8 + $0x10] sm:$0xff]  ;;  %6777 = vrcp.f32 %v3148_v31  ;;  %v5743_v34 = vld [vmem:[#allocation8 + $0x68] sm:$0xff] }
 0x460   :  { %v6606_v50 = vpack.c.bf16 %v5733_v58, %v5732_v7  ;;  %6779 = vrcp.f32 %v7861_v41  ;;  %v5738_v41 = vld [vmem:[#allocation8 + $0x40] sm:$0xff] }
 0x461   :  { %v6618_v3 = vpack.c.bf16 %v5739_v15, %v5738_v41 }
 0x462   :  { %v6768_v18 = vpop.eup %6767  ;;  %v7883_v23 = vpop.xlane.xlu1 %3153  ;;  %6607 = vmatprep.subr.bf16.mxu1 %v6606_v50 }
 0x463   :  { %v5545_v13 = vmul.f32 %v6768_v18, %v7850_v12  ;;  %5719 = vrot.lane.b32.xlu0 %v5544_v0, %s6896_s22  ;;  %v6770_v17 = vpop.eup %6769  ;;  %6609 = vmatpush3.bf16.msra.mxu1 %v6606_v50  ;;  %6781 = vrcp.f32 %v7883_v23  ;;  %v5745_v0 = vld [vmem:[#allocation8 + $0x78] sm:$0xff] }
 0x464   :  { %v6772_v48 = vpop.eup %6771  ;;  %6783 = vrcp.f32 %v7875_v47  ;;  %v6626_v47 = vpack.c.bf16 %v5743_v34, %v5742_v28 }
 0x465   :  { %5562 = vst.msk [vmem:[#allocation2 + $0x8] sm:$0xff] %vm504_vm1, %v5545_v13  ;;  %v6774_v63 = vpop.eup %6773  ;;  %v6630_v13 = vpack.c.bf16 %v5745_v0, %v5744_v55 }
 0x466   :  { %v6776_v29 = vpop.eup %6775 }
 0x469   :  { %v6778_v56 = vpop.eup %6777 }
 0x46a   :  { %v6780_v30 = vpop.eup %6779 }
 0x46d   :  { %v6782_v18 = vpop.eup %6781 }
 0x46e   :  { %v6784_v31 = vpop.eup %6783 }
 0x478   :  { %v5566_v39 = vpop.permute.xlu1 %5565 }
 0x479   :  { %5572 = vst.msk [vmem:[#allocation2] sm:$0xff] %vm5571_vm2, %v5566_v39 }
 0x484   :  { %v4763_v45 = vpop.f32.mrb[62].mxu0  ;;  %v5577_v52 = vpop.permute.xlu1 %5576 }
 0x485   :  { %v5550_v24 = vmul.f32 %v6770_v17, %v4763_v45  ;;  %5583 = vst.msk [vmem:[#allocation2] sm:$0xff] %vm5582_vm3, %v5577_v52  ;;  %v6452_v12 = vpop.f32.mrb[63].mxu0 }
 0x487   :  { %5611 = vrot.lane.b32.xlu1 %v5550_v24, %s6906_s10 }
 0x488   :  { %v4909_v43 = vpop.f32.mrb[64].mxu0  ;;  %v5588_v2 = vpop.permute.xlu0 %5587 }
 0x489   :  { %v6462_v33 = vpop.f32.mrb[65].mxu0  ;;  %5594 = vst.msk [vmem:[#allocation2] sm:$0xff] %vm5593_vm4, %v5588_v2  ;;  %v5552_v38 = vmul.f32 %v6772_v48, %v4909_v43 }
 0x48b   :  { %5622 = vrot.lane.b32.xlu1 %v7859_v59, %s6902_s28  ;;  %v5734_v59 = vld [vmem:[#allocation8 + $0x20] sm:$0xff] }
 0x48c   :  { %v5055_v1 = vpop.f32.mrb[66].mxu0  ;;  %v6610_v62 = vpack.c.bf16 %v5735_v10, %v5734_v59  ;;  %v6789_v10 = vld [vmem:[%s7972_s5] sm:$0xff] }
 0x48d   :  { %v7891_v54 = vpop.f32.mrb[56].mxu1  ;;  %v6472_v51 = vpop.f32.mrb[67].mxu0  ;;  %v5554_v46 = vmul.f32 %v6774_v63, %v5055_v1 }
 0x48e   :  { %v6487_v21 = vpop.f32.mrb[57].mxu1  ;;  %6611 = vmatprep.subr.bf16.mxu1 %v6610_v62 }
 0x48f   :  { %5633 = vrot.lane.b32.xlu1 %v5552_v38, %s6905_s9  ;;  %6613 = vmatpush3.bf16.msra.mxu1 %v6610_v62 }
 0x490   :  { %v5201_v36 = vpop.f32.mrb[68].mxu0  ;;  %6615 = vmatprep.subr.bf16.mxu1 %v6614_v42 }
 0x491   :  { %v7895_v57 = vpop.f32.mrb[58].mxu1  ;;  %v6482_v9 = vpop.f32.mrb[69].mxu0  ;;  %v5556_v4 = vmul.f32 %v6778_v56, %v5201_v36 }
 0x492   :  { %v6497_v6 = vpop.f32.mrb[59].mxu1  ;;  %v5559_v39 = vmul.f32 %v6784_v31, %v7895_v57 }
 0x493   :  { %5644 = vrot.lane.b32.xlu1 %v7863_v22, %s6900_s26  ;;  %6617 = vmatpush3.bf16.msra.mxu1 %v6614_v42  ;;  %v7993_v6 = vld [vmem:[#allocation13_spill] sm:$0xff] }
 0x494   :  { %v5347_v11 = vpop.f32.mrb[70].mxu0  ;;  %v5599_v60 = vpop.permute.xlu0 %5598  ;;  %6619 = vmatprep.subr.bf16.mxu1 %v6618_v3  ;;  %v5748_v59 = vsub.s32 3, %v7993_v6  ;;  %v5858_v34 = vsub.s32 4, %v7993_v6  ;;  %v5864_v55 = vsub.s32 5, %v7993_v6 }
 0x495   :  { %5605 = vst.msk [vmem:[#allocation2] sm:$0xff] %vm5604_vm5, %v5599_v60  ;;  %v6492_v35 = vpop.f32.mrb[71].mxu0  ;;  %v5558_v49 = vmul.f32 %v6782_v18, %v5347_v11 }
 0x496   :  { %v5749_v62 = vrot.slane %v6789_v10, %v5748_v59  ;;  %v6790_v35 = vld [vmem:[%s7967_s0 + $0x8] sm:$0xff]  ;;  %s6908_s0 = smov [#allocation9]  }
 0x497   :  { %5655 = vrot.lane.b32.xlu1 %v5554_v46, %s6903_s29  ;;  %6621 = vmatpush3.bf16.msra.mxu1 %v6618_v3  ;;  %s5875_s5 = sshll.u32 %s6908_s0, 4  ;;  %s5876_s5 = int_to_ptr.vmem [resolvable:$true] %s5875_s5 }
 0x498   :  { %v5493_v22 = vpop.f32.mrb[72].mxu0  ;;  %v5610_v5 = vpop.permute.xlu0 %5609  ;;  %6623 = vmatprep.subr.bf16.mxu1 %v6622_v61  ;;  %s6858_s15 = scalar_lea.vmem %s5876_s5, 256  ;;  %p6863_p11 = scmp.lt.s32.totalorder %s5876_s5, %s5876_s5 }
 0x499   :  { %v5560_v40 = vmul.f32 %v6776_v29, %v5493_v22  ;;  %5616 = vst.msk [vmem:[#allocation2] sm:$0xff] %vm5615_vm6, %v5610_v5  ;;  %v6502_v27 = vpop.f32.mrb[73].mxu0  ;;  %v7994_v29 = vlaneseq  ;;  %p6859_p10 = scmp.ne.s32.totalorder %s5876_s5, %s6858_s15  ;;  %p6864_p12 = scmp.lt.s32.totalorder %s6858_s15, %s6858_s15 }
 0x49b   :  { %5666 = vrot.lane.b32.xlu1 %v7869_v25, %s6898_s24  ;;  %v5557_v25 = vmul.f32 %v6780_v30, %v7891_v54  ;;  %6625 = vmatpush3.bf16.msra.mxu1 %v6622_v61  ;;  %v5836_v22 = vand.u32 127, %v7994_v29  ;;  %p6865_p13 = por %p6864_p12, %p6863_p11 }
 0x49c   :  { %v5621_v26 = vpop.permute.xlu0 %5620  ;;  %6627 = vmatprep.subr.bf16.mxu1 %v6626_v47 }
 0x49d   :  { %5627 = vst.msk [vmem:[#allocation2] sm:$0xff] %vm5626_vm7, %v5621_v26  ;;  %vm5837_vm1 = vcmp.lt.s32.totalorder %v5836_v22, 32  ;;  %p6866_p0 = pnand %p6865_p13, %p6859_p10 }
 0x49f   :  { %5677 = vrot.lane.b32.xlu1 %v5556_v4, %s6901_s27  ;;  %6629 = vmatpush3.bf16.msra.mxu1 %v6626_v47  ;;  %v5859_v47 = vrot.slane %v6789_v10, %v5858_v34 }
 0x4a0   :  { %v5632_v32 = vpop.permute.xlu0 %5631  ;;  %6631 = vmatprep.subr.bf16.mxu1 %v6630_v13 }
 0x4a1   :  { %5638 = vst.msk [vmem:[#allocation2] sm:$0xff] %vm5637_vm8, %v5632_v32 }
 0x4a3   :  { %5688 = vrot.lane.b32.xlu1 %v5557_v25, %s6899_s25  ;;  %6633 = vmatpush3.bf16.msra.mxu1 %v6630_v13 }
 0x4a4   :  { %v5643_v53 = vpop.permute.xlu0 %5642 }
 0x4a5   :  { %5649 = vst.msk [vmem:[#allocation2] sm:$0xff] %vm5648_vm9, %v5643_v53  ;;  %v5865_v53 = vrot.slane %v6789_v10, %v5864_v55 }
 0x4a7   :  { %5699 = vrot.lane.b32.xlu1 %v5558_v49, %s6897_s23 }
 0x4a8   :  { %v5654_v23 = vpop.permute.xlu0 %5653 }
 0x4a9   :  { %5660 = vst.msk [vmem:[#allocation2] sm:$0xff] %vm5659_vm10, %v5654_v23 }
 0x4ab   :  { %5710 = vrot.lane.b32.xlu1 %v5559_v39, %s6895_s3 }
 0x4ac   :  { %v5665_v17 = vpop.permute.xlu0 %5664 }
 0x4ad   :  { %5671 = vst.msk [vmem:[#allocation2] sm:$0xff] %vm5670_vm11, %v5665_v17 }
 0x4af   :  { %5721 = vrot.lane.b32.xlu1 %v5560_v40, %s6896_s22 }
 0x4b0   :  { %v5676_v45 = vpop.permute.xlu0 %5675 }
 0x4b1   :  { %5682 = vst.msk [vmem:[#allocation2] sm:$0xff] %vm5681_vm12, %v5676_v45 }
 0x4b8   :  { %v5579_v24 = vpop.permute.xlu1 %5578 }
 0x4c5   :  { %v5568_v52 = vpop.permute.xlu0 %5567 }
 0x4c6   :  { %5573 = vst.msk [vmem:[#allocation2 + $0x8] sm:$0xff] %vm5571_vm2, %v5568_v52 }
 0x4c7   :  { %5584 = vst.msk [vmem:[#allocation2 + $0x8] sm:$0xff] %vm5582_vm3, %v5579_v24 }
 0x4c9   :  { %v5687_v12 = vpop.permute.xlu0 %5686 }
 0x4ca   :  { %5693 = vst.msk [vmem:[#allocation2] sm:$0xff] %vm5692_vm13, %v5687_v12 }
 0x4cd   :  { %v5698_v43 = vpop.permute.xlu0 %5697  ;;  %v5590_v2 = vpop.permute.xlu1 %5589 }
 0x4ce   :  { %5704 = vst.msk [vmem:[#allocation2] sm:$0xff] %vm5703_vm14, %v5698_v43 }
 0x4cf   :  { %5595 = vst.msk [vmem:[#allocation2 + $0x8] sm:$0xff] %vm5593_vm4, %v5590_v2 }
 0x4d1   :  { %v5709_v33 = vpop.permute.xlu0 %5708  ;;  %v5601_v8 = vpop.permute.xlu1 %5600 }
 0x4d2   :  { %5715 = vst.msk [vmem:[#allocation2] sm:$0xff] %vm5714_vm15, %v5709_v33 }
 0x4d3   :  { %5606 = vst.msk [vmem:[#allocation2 + $0x8] sm:$0xff] %vm5604_vm5, %v5601_v8 }
 0x4d5   :  { %v5720_v16 = vpop.permute.xlu0 %5719 }
 0x4d6   :  { %5726 = vst.msk [vmem:[#allocation2] sm:$0xff] %vm5725_vm0, %v5720_v16 }
 0x4dd   :  { %v5728_v44 = vld [vmem:[#allocation2] sm:$0xff] }
 0x4de   :  { %6535 = vmatprep.mubr.f32.mxu1 %v5728_v44 }
 0x4f9   :  { %v5612_v48 = vpop.permute.xlu1 %5611 }
 0x4fa   :  { %5617 = vst.msk [vmem:[#allocation2 + $0x8] sm:$0xff] %vm5615_vm6, %v5612_v48 }
 0x4fd   :  { %v5623_v1 = vpop.permute.xlu1 %5622 }
 0x4fe   :  { %5628 = vst.msk [vmem:[#allocation2 + $0x8] sm:$0xff] %vm5626_vm7, %v5623_v1 }
 0x501   :  { %v5634_v38 = vpop.permute.xlu1 %5633 }
 0x502   :  { %5639 = vst.msk [vmem:[#allocation2 + $0x8] sm:$0xff] %vm5637_vm8, %v5634_v38 }
 0x505   :  { %v5645_v54 = vpop.permute.xlu1 %5644 }
 0x506   :  { %5650 = vst.msk [vmem:[#allocation2 + $0x8] sm:$0xff] %vm5648_vm9, %v5645_v54 }
 0x509   :  { %v5656_v51 = vpop.permute.xlu1 %5655 }
 0x50a   :  { %5661 = vst.msk [vmem:[#allocation2 + $0x8] sm:$0xff] %vm5659_vm10, %v5656_v51 }
 0x50d   :  { %v5667_v21 = vpop.permute.xlu1 %5666 }
 0x50e   :  { %5672 = vst.msk [vmem:[#allocation2 + $0x8] sm:$0xff] %vm5670_vm11, %v5667_v21 }
 0x511   :  { %v5678_v7 = vpop.permute.xlu1 %5677 }
 0x512   :  { %5683 = vst.msk [vmem:[#allocation2 + $0x8] sm:$0xff] %vm5681_vm12, %v5678_v7 }
 0x515   :  { %v5689_v58 = vpop.permute.xlu1 %5688 }
 0x516   :  { %5694 = vst.msk [vmem:[#allocation2 + $0x8] sm:$0xff] %vm5692_vm13, %v5689_v58 }
 0x519   :  { %v5700_v50 = vpop.permute.xlu1 %5699 }
 0x51a   :  { %5705 = vst.msk [vmem:[#allocation2 + $0x8] sm:$0xff] %vm5703_vm14, %v5700_v50 }
 0x51d   :  { %v5711_v36 = vpop.permute.xlu1 %5710 }
 0x51e   :  { %5716 = vst.msk [vmem:[#allocation2 + $0x8] sm:$0xff] %vm5714_vm15, %v5711_v36 }
 0x521   :  { %v5722_v57 = vpop.permute.xlu1 %5721 }
 0x522   :  { %5727 = vst.msk [vmem:[#allocation2 + $0x8] sm:$0xff] %vm5725_vm0, %v5722_v57 }
 0x529   :  { %v5729_v9 = vld [vmem:[#allocation2 + $0x8] sm:$0xff] }
 0x52a   :  { %6536 = vmatmul.mubr.f32.vlgmr.msra.gmra.mrb[60].mxu1 %v5729_v9 }
 0x5fd   :  { %v6537_v63 = vpop.f32.mrb[60].mxu1 }
 0x5fe   :  { %v5822_v11 = vadd.f32 %v6537_v63, %v5749_v62  ;;  %v5816_v60 = vpop.f32.mrb[61].mxu1 }
 0x5ff   :  { %v5817_v46 = vadd.f32 %v5816_v60, %v5749_v62 }
 0x600   :  { %v5826_v20 = vadd.f32 %v6790_v35, %v5822_v11 }
 0x601   :  { %v5825_v42 = vadd.f32 %v6791_v37, %v5817_v46 }
 0x602   :  { %5829 = vadd.xlane.f32.xlu1 %v5826_v20 }
 0x603   :  { %5827 = vadd.xlane.f32.xlu0 %v5825_v42 }
 0x68f   :  { %v5830_v5 = vpop.xlane.xlu1 %5829 }
 0x690   :  { %v5832_v40 = vmul.f32 0.03125, %v5830_v5  ;;  %v5828_v27 = vpop.xlane.xlu0 %5827 }
 0x691   :  { %v5831_v41 = vmul.f32 0.03125, %v5828_v27 }
 0x692   :  { %v5834_v15 = vsub.f32 %v5826_v20, %v5832_v40 }
 0x693   :  { %v5833_v3 = vsub.f32 %v5825_v42, %v5831_v41 }
 0x694   :  { %v5841_v4 = vsel %vm5837_vm1, %v5834_v15, 0.0 }
 0x695   :  { %v5840_v56 = vsel %vm5837_vm1, %v5833_v3, 0.0  ;;  %v5843_v19 = vmul.f32 %v5841_v4, %v5841_v4 }
 0x696   :  { %v5842_v26 = vmul.f32 %v5840_v56, %v5840_v56 }
 0x698   :  { %5844 = vadd.xlane.f32.xlu0 %v5842_v26 }
 0x69c   :  { %5846 = vadd.xlane.f32.xlu0 %v5843_v19 }
 0x725   :  { %v5845_v14 = vpop.xlane.xlu0 %5844 }
 0x726   :  { %v5848_v61 = vmul.f32 0.03125, %v5845_v14 }
 0x728   :  { %v5850_v30 = vadd.f32 1e-05, %v5848_v61 }
 0x729   :  { %v5847_v32 = vpop.xlane.xlu0 %5846 }
 0x72a   :  { %6785 = vrsqrt.f32 %v5850_v30  ;;  %v5849_v25 = vmul.f32 0.03125, %v5847_v32 }
 0x72c   :  { %v5851_v28 = vadd.f32 1e-05, %v5849_v25 }
 0x72e   :  { %6787 = vrsqrt.f32 %v5851_v28 }
 0x734   :  { %v6786_v0 = vpop.eup %6785 }
 0x735   :  { %v5854_v18 = vmul.f32 %v6786_v0, %v5840_v56 }
 0x737   :  { %v5860_v13 = vmul.f32 %v5859_v47, %v5854_v18 }
 0x738   :  { %v6788_v49 = vpop.eup %6787 }
 0x739   :  { %v5855_v31 = vmul.f32 %v6788_v49, %v5841_v4  ;;  %v5866_v23 = vadd.f32 %v5865_v53, %v5860_v13 }
 0x73b   :  { %v5861_v39 = vmul.f32 %v5859_v47, %v5855_v31  ;;  %5868 = vst [vmem:[#allocation9] sm:$0xff] %v5866_v23 }
 0x73d   :  { %v5867_v17 = vadd.f32 %v5865_v53, %v5861_v39 }
 0x73f   :  { %5869 = vst [vmem:[#allocation9 + $0x8] sm:$0xff] %v5867_v17 }
 0x740   :  { %6869 = shalt.err (!%p6866_p0)
}
 0x741   :  { %s6870_s18 = scalar_lea.hbm %s7973_s6, 256 }
 0x742   :  { %p6871_p1 = scmp.ne.s32.totalorder %s7973_s6, %s6870_s18  ;;  %p6874_p2 = scmp.lt.u32.totalorder %s6870_s18, %s7973_s6 }
 0x744   :  { %p6876_p3 = pnand %p6874_p2, %p6871_p1 }
 0x746   :  { %6879 = shalt.err (!%p6876_p3)
}
 0x747   :  { %5881 = dma.vmem_to_hbm [thread:$0]  %s5876_s5, 256, %s7973_s6, [#allocation5], %s6887_s7, %s6887_s7, %s6888_s8  }
 0x748   :  { %6884 = dma.done.wait [#allocation5], 256  }
 0x749   :  { %6885 = vsyncadd [#allocation5], 4294967040 }
 0x74a   :  { %5885 = vsyncpa [#allocation4], 1 }
 0x74b   :  { %5886 = vsyncpa [#allocation7], 1 }
 0x74c   :  { %5887 = vsyncpa [#allocation5], 1 }

</bundles_post_ra>
